<compile_context>
chip_gen: v7x
topology: tpu7x:2x2x1
jax: 0.10.0
libtpu: 0.0.40
codegen_flags: <defaults>
</compile_context>

<pallas_src>
import jax
import jax.numpy as jnp
from jax.experimental import pallas as pl
from jax.experimental.pallas import tpu as pltpu


def _round_up(a: int, b: int) -> int:
    return (a + b - 1) // b * b


def _patch_embed_kernel(x_ref, w_ref, b_ref, o_ref):
    # x_ref: (tm, K)  w_ref: (K, D_pad) resident  b_ref: (1, D_pad) f32
    # o_ref: (tm, D_pad)
    acc = jnp.dot(x_ref[...], w_ref[...], preferred_element_type=jnp.float32)
    o_ref[...] = (acc + b_ref[...]).astype(o_ref.dtype)


def patch_embed(x, weight, bias, *, stride=None, mxu_dtype=None):
    """PatchEmbed forward.

    x:      (N, C, H, W)           NCHW input
    weight: (D, C, ph, pw)         PyTorch Conv2d weight layout
    bias:   (D,)
    mxu_dtype: optional dtype (e.g. jnp.bfloat16) to cast the GEMM operands to
               (accumulation stays f32). Default None = keep caller dtype.
    Returns (N, H//ph, W//pw, D)   i.e. conv output permuted (0, 2, 3, 1).
    """
    N, C, H, W = x.shape
    D, Cw, ph, pw = weight.shape
    assert C == Cw
    if stride is not None:
        assert tuple(stride) == (ph, pw), "patchify requires stride == kernel_size"
    assert H % ph == 0 and W % pw == 0
    Hp, Wp = H // ph, W // pw
    M = N * Hp * Wp
    K = C * ph * pw

    # ---- Patch extraction (layout only, stays in XLA) ----
    # (N, C, H, W) -> (N, Hp, Wp, C, ph, pw) -> (M, K)
    # TODO(synk): for very large batches, fold this patchify into the kernel
    # (BlockSpec over the 6-D view) to save one HBM pass over the activation.
    patches = (
        x.reshape(N, C, Hp, ph, Wp, pw).transpose(0, 2, 4, 1, 3, 5).reshape(M, K)
    )
    # Conv weight (D, C, ph, pw) -> GEMM weight (K, D); same (C, ph, pw) order.
    w_mat = weight.reshape(D, K).T

    in_dtype = x.dtype
    if mxu_dtype is not None:
        patches = patches.astype(mxu_dtype)
        w_mat = w_mat.astype(mxu_dtype)
    else:
        w_mat = w_mat.astype(in_dtype)

    op_itemsize = jnp.dtype(patches.dtype).itemsize
    out_itemsize = jnp.dtype(in_dtype).itemsize
    sub = {4: 8, 2: 16, 1: 32}.get(op_itemsize, 8)

    # Output lane dim: pad D to a 128 multiple only if misaligned (lane-dense
    # stores); D=768 etc. needs no pad.
    D_pad = _round_up(D, 128)

    # M tile: large, 256-aligned for the v6e/v7x MXU; keep >=2 blocks along M
    # when M is large enough so v7x can shard the grid across both cores.
    if M >= 2 * 512:
        tm = 512
    elif M >= 256:
        tm = 256
    else:
        tm = _round_up(M, sub)
    M_pad = _round_up(M, tm)

    # VMEM working set: double-buffered x / w / out blocks + bias.
    def _vmem_est(tm_):
        return (
            2 * op_itemsize * (tm_ * K + K * D_pad)   # x block + resident weight
            + 2 * out_itemsize * tm_ * D_pad          # output block
            + 2 * 4 * D_pad                           # bias row (f32)
        )

    # Shrink tm if the resident-weight working set would overflow a safe budget
    # (keeps the request below v7x's 64 MiB physical VMEM with headroom).
    _BUDGET = 40 * 1024 * 1024
    while _vmem_est(tm) > _BUDGET and tm > max(sub, 64):
        tm = max(sub, _round_up(tm // 2, sub))
        M_pad = _round_up(M, tm)

    # ---- Conditional padding (skip the extra HBM pass when already aligned) ----
    if M_pad != M:
        patches = jnp.pad(patches, ((0, M_pad - M), (0, 0)))
    if D_pad != D:
        w_mat = jnp.pad(w_mat, ((0, 0), (0, D_pad - D)))
    b_row = bias.astype(jnp.float32).reshape(1, D)
    if D_pad != D:
        b_row = jnp.pad(b_row, ((0, 0), (0, D_pad - D)))

    grid = (M_pad // tm,)

    vmem_est = _vmem_est(tm)
    params = dict(dimension_semantics=("parallel",))
    if vmem_est > 12 * 1024 * 1024:
        # Only ever raise above the per-generation default scoped limit
        # (16 MiB v5e / 32 MiB v6e,v7x); include headroom; stay under v7x's
        # 64 MiB physical VMEM.
        params["vmem_limit_bytes"] = min(
            max(32 * 1024 * 1024, int(vmem_est * 1.5)), 60 * 1024 * 1024
        )

    out_p = pl.pallas_call(
        _patch_embed_kernel,
        out_shape=jax.ShapeDtypeStruct((M_pad, D_pad), in_dtype),
        grid_spec=pltpu.PrefetchScalarGridSpec(
            num_scalar_prefetch=0,
            grid=grid,
            in_specs=[
                pl.BlockSpec((tm, K), lambda i: (i, 0)),       # activations
                pl.BlockSpec((K, D_pad), lambda i: (0, 0)),    # resident weight
                pl.BlockSpec((1, D_pad), lambda i: (0, 0)),    # bias (f32)
            ],
            out_specs=pl.BlockSpec((tm, D_pad), lambda i: (i, 0)),
        ),
        compiler_params=pltpu.CompilerParams(**params),
    )(patches, w_mat, b_row)

    out = out_p
    if M_pad != M or D_pad != D:
        out = out_p[:M, :D]
    return out.reshape(N, Hp, Wp, D)


def _patch_embed_ref(x, weight, bias):
    N, C, H, W = x.shape
    D, _, ph, pw = weight.shape
    Hp, Wp = H // ph, W // pw
    p = (
        x.reshape(N, C, Hp, ph, Wp, pw)
        .transpose(0, 2, 4, 1, 3, 5)
        .reshape(N, Hp, Wp, C * ph * pw)
    )
    w = weight.reshape(D, -1).T
    y = jnp.einsum("nhwk,kd->nhwd", p, w, precision=jax.lax.Precision.HIGHEST)
    return y + bias


if __name__ == "__main__":
    key = jax.random.PRNGKey(0)
    kx, kw, kb = jax.random.split(key, 3)

    # Small shapes consistent with the module: 3-channel image, 16x16 patches,
    # embed_dim=768, 32x32 image -> 2x2 grid of patches.
    N, C, H, W = 2, 3, 32, 32
    ph = pw = 16
    D = 768

    x = jax.random.normal(kx, (N, C, H, W), dtype=jnp.float32)
    fan_in = C * ph * pw
    weight = jax.random.normal(kw, (D, C, ph, pw), dtype=jnp.float32) / jnp.sqrt(
        float(fan_in)
    )
    bias = 0.01 * jax.random.normal(kb, (D,), dtype=jnp.float32)

    out = patch_embed(x, weight, bias, stride=(ph, pw))
    out = jax.block_until_ready(out)

    ref = _patch_embed_ref(x, weight, bias)
    assert out.shape == (N, H // ph, W // pw, D)
    assert jnp.allclose(out, ref, atol=2e-3, rtol=2e-3), float(
        jnp.max(jnp.abs(out - ref))
    )

    print("KERNEL_OK")
</pallas_src>

<mosaic_0001>
module attributes {stable_mosaic.version = 11 : i64} {
  func.func @_patch_embed_kernel(%arg0: i32, %arg1: memref<8x768xf32, #tpu.memory_space<vmem>>, %arg2: memref<768x768xf32, #tpu.memory_space<vmem>>, %arg3: memref<1x768xf32, #tpu.memory_space<vmem>>, %arg4: memref<8x768xf32, #tpu.memory_space<vmem>>) attributes {dimension_semantics = [#tpu.dimension_semantics<parallel>], iteration_bounds = array<i64: 1>, scalar_prefetch = 0 : i64, scratch_operands = 0 : i64, tpu.core_type = #tpu.core_type<tc>, window_params = [{transform_indices = @transform_0, window_bounds = array<i64: 8, 768>}, {pipeline_mode = #tpu.pipeline_mode<synchronous>, transform_indices = @transform_1, window_bounds = array<i64: 768, 768>}, {pipeline_mode = #tpu.pipeline_mode<synchronous>, transform_indices = @transform_2, window_bounds = array<i64: 1, 768>}, {transform_indices = @transform_3, window_bounds = array<i64: 8, 768>}]} {
    %c0 = arith.constant 0 : index
    %c0_0 = arith.constant 0 : index
    %0 = vector.load %arg1[%c0, %c0_0] : memref<8x768xf32, #tpu.memory_space<vmem>>, vector<8x768xf32>
    %c0_1 = arith.constant 0 : index
    %c0_2 = arith.constant 0 : index
    %1 = vector.load %arg2[%c0_1, %c0_2] : memref<768x768xf32, #tpu.memory_space<vmem>>, vector<768x768xf32>
    %cst = arith.constant dense<0.000000e+00> : vector<8x768xf32>
    %2 = tpu.matmul %0, %1, %cst {dimension_numbers = #tpu.dot_dimension_numbers<[1], [0], [0], [1], [0, 0, 1, 1], [], []>} : vector<8x768xf32>, vector<768x768xf32>, vector<8x768xf32> -> vector<8x768xf32>
    %c0_3 = arith.constant 0 : index
    %c0_4 = arith.constant 0 : index
    %3 = vector.load %arg3[%c0_3, %c0_4] : memref<1x768xf32, #tpu.memory_space<vmem>>, vector<1x768xf32>
    %4 = vector.broadcast %3 : vector<1x768xf32> to vector<8x768xf32>
    %5 = arith.addf %2, %4 : vector<8x768xf32>
    %c0_5 = arith.constant 0 : index
    %c0_6 = arith.constant 0 : index
    %6 = vector.load %arg4[%c0_5, %c0_6] : memref<8x768xf32, #tpu.memory_space<vmem>>, vector<8x768xf32>
    tpu.vector_store %arg4[%c0_5, %c0_6], %5 {strides = array<i32>} : memref<8x768xf32, #tpu.memory_space<vmem>>, vector<8x768xf32>,
    return
  }
  func.func @transform_0(%arg0: i32) -> (i32, i32) {
    %c0_i32 = arith.constant 0 : i32
    %c0_i32_0 = arith.constant 0 : i32
    return %arg0, %c0_i32 : i32, i32
  }
  func.func @transform_1(%arg0: i32) -> (i32, i32) {
    %c0_i32 = arith.constant 0 : i32
    %c0_i32_0 = arith.constant 0 : i32
    %c0_i32_1 = arith.constant 0 : i32
    return %c0_i32, %c0_i32_0 : i32, i32
  }
  func.func @transform_2(%arg0: i32) -> (i32, i32) {
    %c0_i32 = arith.constant 0 : i32
    %c0_i32_0 = arith.constant 0 : i32
    %c0_i32_1 = arith.constant 0 : i32
    return %c0_i32, %c0_i32_0 : i32, i32
  }
  func.func @transform_3(%arg0: i32) -> (i32, i32) {
    %c0_i32 = arith.constant 0 : i32
    %c0_i32_0 = arith.constant 0 : i32
    return %arg0, %c0_i32 : i32, i32
  }
}

</mosaic_0001>

<bundles_post_ra>
// kernel: tpu_custom_call.1
= control target key start
LH: loop header
LB: loop body
LE: loop exit
PB: predicated region body
PF: predicated region fallthrough
CT: control target
= control target key end

     0   :  { %8 = vsyncpa [#allocation3], 0  ;;  %s2131_s0 = inlined_call_operand.hbm [shape: f32[8,768], index: 0, kind: input, shape index: {}]   ;;  %s2132_s1 = inlined_call_operand.hbm [shape: f32[768,768], index: 1, kind: input, shape index: {}]   ;;  %s2133_s2 = inlined_call_operand.hbm [shape: f32[1,768], index: 2, kind: input, shape index: {}]   ;;  %s2134_s3 = inlined_call_operand.hbm [shape: f32[8,768], index: 3, kind: output, shape index: {}]  }
   0x1   :  { %9 = vsyncpa [#allocation6], 0 }
   0x2   :  { %10 = vsyncpa [#allocation4], 0  ;;  %s2026_s12 = smov [#allocation5]   ;;  %s1932_s16 = scalar_lea.hbm %s2132_s1, 73728 }
   0x3   :  { %s26_s13 = sshll.u32 %s2026_s12, 4  ;;  %p1933_p0 = scmp.ne.s32.totalorder %s2132_s1, %s1932_s16  ;;  %s27_s13 = int_to_ptr.vmem [resolvable:$true] %s26_s13 }
   0x4   :  { %p1936_p1 = scmp.lt.u32.totalorder %s1932_s16, %s2132_s1 }
   0x6   :  { %p1938_p2 = pnand %p1936_p1, %p1933_p0 }
   0x8   :  { %1941 = shalt.err (!%p1938_p2)
}
   0x9   :  { %s1942_s21 = scalar_lea.vmem %s27_s13, 73728  ;;  %p1947_p4 = scmp.lt.s32.totalorder %s27_s13, %s27_s13 }
   0xa   :  { %p1943_p3 = scmp.ne.s32.totalorder %s27_s13, %s1942_s21  ;;  %p1948_p5 = scmp.lt.s32.totalorder %s1942_s21, %s1942_s21 }
   0xc   :  { %p1949_p6 = por %p1948_p5, %p1947_p4 }
   0xe   :  { %p1950_p7 = pnand %p1949_p6, %p1943_p3 }
  0x10   :  { %1953 = shalt.err (!%p1950_p7)
}
  0x11   :  { %s2027_s22 = smov 768   ;;  %s2028_s23 = smov 48  }
  0x12   :  { %32 = dma.hbm_to_vmem [thread:$0]  %s2132_s1, 73728, %s27_s13, [#allocation6], %s2027_s22, %s2027_s22, %s2028_s23  }
  0x13   :  { %s2029_s26 = smov [#allocation2]   ;;  %s2030_s28 = smov [#allocation7]  }
  0x14   :  { %s17_s27 = sshll.u32 %s2029_s26, 4  ;;  %s39_s29 = sshll.u32 %s2030_s28, 4  ;;  %s18_s27 = int_to_ptr.vmem [resolvable:$true] %s17_s27  ;;  %s40_s29 = int_to_ptr.vmem [resolvable:$true] %s39_s29 }
  0x15   :  { %s1954_s5 = scalar_lea.hbm %s2131_s0, 768 }
  0x16   :  { %p1955_p8 = scmp.ne.s32.totalorder %s2131_s0, %s1954_s5  ;;  %p1958_p9 = scmp.lt.u32.totalorder %s1954_s5, %s2131_s0 }
  0x18   :  { %p1960_p10 = pnand %p1958_p9, %p1955_p8 }
  0x1a   :  { %1963 = shalt.err (!%p1960_p10)
}
  0x1b   :  { %s1964_s1 = scalar_lea.vmem %s18_s27, 768  ;;  %p1969_p12 = scmp.lt.s32.totalorder %s18_s27, %s18_s27 }
  0x1c   :  { %p1965_p11 = scmp.ne.s32.totalorder %s18_s27, %s1964_s1  ;;  %p1970_p13 = scmp.lt.s32.totalorder %s1964_s1, %s1964_s1 }
  0x1e   :  { %p1971_p0 = por %p1970_p13, %p1969_p12 }
  0x20   :  { %p1972_p1 = pnand %p1971_p0, %p1965_p11 }
  0x22   :  { %1975 = shalt.err (!%p1972_p1)
}
  0x23   :  { %20 = dma.hbm_to_vmem [thread:$0]  %s2131_s0, 768, %s18_s27, [#allocation3]  }
  0x24   :  { %s1976_s14 = scalar_lea.hbm %s2133_s2, 96 }
  0x25   :  { %p1977_p2 = scmp.ne.s32.totalorder %s2133_s2, %s1976_s14  ;;  %p1980_p3 = scmp.lt.u32.totalorder %s1976_s14, %s2133_s2 }
  0x27   :  { %p1982_p4 = pnand %p1980_p3, %p1977_p2 }
  0x29   :  { %1985 = shalt.err (!%p1982_p4)
}
  0x2a   :  { %s1986_s19 = scalar_lea.vmem %s40_s29, 96  ;;  %p1991_p6 = scmp.lt.s32.totalorder %s40_s29, %s40_s29 }
  0x2b   :  { %p1987_p5 = scmp.ne.s32.totalorder %s40_s29, %s1986_s19  ;;  %p1992_p7 = scmp.lt.s32.totalorder %s1986_s19, %s1986_s19 }
  0x2d   :  { %p1993_p8 = por %p1992_p7, %p1991_p6 }
  0x2f   :  { %p1994_p9 = pnand %p1993_p8, %p1987_p5 }
  0x31   :  { %1997 = shalt.err (!%p1994_p9)
}
  0x32   :  { %42 = dma.hbm_to_vmem [thread:$0]  %s2133_s2, 96, %s40_s29, [#allocation6]  }
  0x33   :  { %2020 = dma.done.wait [#allocation3], 768  }
  0x34   :  { %2021 = vsyncadd [#allocation3], 4294966528 }
  0x35   :  { %2022 = dma.done.wait [#allocation6], 73824  }
  0x36   :  { %2023 = vsyncadd [#allocation6], 4294893472  ;;  %v59_v0 = vld [vmem:[#allocation5 + $0x8] sm:$0xff]  ;;  %v65_v1 = vld [vmem:[#allocation5 + $0x38] sm:$0xff]  ;;  %s2031_s2 = smov [#allocation8]  }
  0x37   :  { %v251_v2 = vld [vmem:[#allocation5 + $0x608] sm:$0xff]  ;;  %v1327_v3 = vpack.c.bf16 %v65_v1, %v59_v0  ;;  %v257_v4 = vld [vmem:[#allocation5 + $0x638] sm:$0xff]  ;;  %v58_v5 = vld [vmem:[#allocation5] sm:$0xff]  ;;  %s1317_s21 = sshll.u32 %s2031_s2, 4  ;;  %s1318_s21 = int_to_ptr.vmem [resolvable:$true] %s1317_s21 }
  0x38   :  { %v64_v6 = vld [vmem:[#allocation5 + $0x30] sm:$0xff]  ;;  %v1391_v7 = vpack.c.bf16 %v257_v4, %v251_v2  ;;  %v250_v9 = vld [vmem:[#allocation5 + $0x600] sm:$0xff]  ;;  %v71_v11 = vld [vmem:[#allocation5 + $0x68] sm:$0xff]  ;;  %s1998_s22 = scalar_lea.vmem %s1318_s21, 768  ;;  %p2003_p11 = scmp.lt.s32.totalorder %s1318_s21, %s1318_s21 }
  0x39   :  { %v1329_v8 = vpack.c.bf16 %v64_v6, %v58_v5  ;;  %v256_v10 = vld [vmem:[#allocation5 + $0x630] sm:$0xff]  ;;  %1328 = vmatprep.subr.bf16.mxu1 %v1327_v3  ;;  %v77_v13 = vld [vmem:[#allocation5 + $0x98] sm:$0xff]  ;;  %v263_v14 = vld [vmem:[#allocation5 + $0x668] sm:$0xff]  ;;  %p1999_p10 = scmp.ne.s32.totalorder %s1318_s21, %s1998_s22  ;;  %p2004_p12 = scmp.lt.s32.totalorder %s1998_s22, %s1998_s22 }
  0x3a   :  { %v1393_v12 = vpack.c.bf16 %v256_v10, %v250_v9  ;;  %v269_v15 = vld [vmem:[#allocation5 + $0x698] sm:$0xff]  ;;  %1392 = vmatprep.subr.bf16.mxu0 %v1391_v7  ;;  %v1331_v16 = vpack.c.bf16 %v77_v13, %v71_v11  ;;  %v70_v18 = vld [vmem:[#allocation5 + $0x60] sm:$0xff]  ;;  %v76_v19 = vld [vmem:[#allocation5 + $0x90] sm:$0xff] }
  0x3b   :  { %1330 = vmatpush1.bf16.msra.mxu1 %v1329_v8  ;;  %v1395_v17 = vpack.c.bf16 %v269_v15, %v263_v14  ;;  %v262_v20 = vld [vmem:[#allocation5 + $0x660] sm:$0xff]  ;;  %v1333_v21 = vpack.c.bf16 %v76_v19, %v70_v18  ;;  %v268_v22 = vld [vmem:[#allocation5 + $0x690] sm:$0xff]  ;;  %v83_v23 = vld [vmem:[#allocation5 + $0xc8] sm:$0xff]  ;;  %p2005_p13 = por %p2004_p12, %p2003_p11 }
  0x3c   :  { %1394 = vmatpush1.bf16.msra.mxu0 %v1393_v12  ;;  %v89_v24 = vld [vmem:[#allocation5 + $0xf8] sm:$0xff]  ;;  %1332 = vmatprep.subr.bf16.mxu1 %v1331_v16  ;;  %v1397_v25 = vpack.c.bf16 %v268_v22, %v262_v20  ;;  %v275_v27 = vld [vmem:[#allocation5 + $0x6c8] sm:$0xff]  ;;  %v82_v29 = vld [vmem:[#allocation5 + $0xc0] sm:$0xff] }
  0x3d   :  { %1396 = vmatprep.subr.bf16.mxu0 %v1395_v17  ;;  %v1335_v26 = vpack.c.bf16 %v89_v24, %v83_v23  ;;  %v281_v28 = vld [vmem:[#allocation5 + $0x6f8] sm:$0xff]  ;;  %v88_v31 = vld [vmem:[#allocation5 + $0xf0] sm:$0xff]  ;;  %v274_v32 = vld [vmem:[#allocation5 + $0x6c0] sm:$0xff]  ;;  %p2006_p0 = pnand %p2005_p13, %p1999_p10 }
  0x3e   :  { %v1399_v30 = vpack.c.bf16 %v281_v28, %v275_v27  ;;  %v280_v33 = vld [vmem:[#allocation5 + $0x6f0] sm:$0xff]  ;;  %v1337_v34 = vpack.c.bf16 %v88_v31, %v82_v29  ;;  %v95_v35 = vld [vmem:[#allocation5 + $0x128] sm:$0xff]  ;;  %v101_v36 = vld [vmem:[#allocation5 + $0x158] sm:$0xff] }
  0x3f   :  { %1334 = vmatpush1.bf16.msra.mxu1 %v1333_v21  ;;  %v287_v37 = vld [vmem:[#allocation5 + $0x728] sm:$0xff]  ;;  %v1401_v38 = vpack.c.bf16 %v280_v33, %v274_v32  ;;  %v1339_v39 = vpack.c.bf16 %v101_v36, %v95_v35  ;;  %v293_v40 = vld [vmem:[#allocation5 + $0x758] sm:$0xff]  ;;  %v94_v41 = vld [vmem:[#allocation5 + $0x120] sm:$0xff] }
  0x40   :  { %1398 = vmatpush1.bf16.msra.mxu0 %v1397_v25  ;;  %1336 = vmatprep.subr.bf16.mxu1 %v1335_v26  ;;  %v100_v42 = vld [vmem:[#allocation5 + $0x150] sm:$0xff]  ;;  %v1403_v43 = vpack.c.bf16 %v293_v40, %v287_v37  ;;  %v286_v44 = vld [vmem:[#allocation5 + $0x720] sm:$0xff]  ;;  %v107_v46 = vld [vmem:[#allocation5 + $0x188] sm:$0xff] }
  0x41   :  { %1400 = vmatprep.subr.bf16.mxu0 %v1399_v30  ;;  %v292_v45 = vld [vmem:[#allocation5 + $0x750] sm:$0xff]  ;;  %v113_v47 = vld [vmem:[#allocation5 + $0x1b8] sm:$0xff]  ;;  %v299_v48 = vld [vmem:[#allocation5 + $0x788] sm:$0xff]  ;;  %v1341_v50 = vpack.c.bf16 %v100_v42, %v94_v41 }
  0x42   :  { %v305_v49 = vld [vmem:[#allocation5 + $0x7b8] sm:$0xff]  ;;  %v1405_v51 = vpack.c.bf16 %v292_v45, %v286_v44  ;;  %v1343_v52 = vpack.c.bf16 %v113_v47, %v107_v46  ;;  %v106_v53 = vld [vmem:[#allocation5 + $0x180] sm:$0xff]  ;;  %v112_v54 = vld [vmem:[#allocation5 + $0x1b0] sm:$0xff] }
  0x43   :  { %1338 = vmatpush1.bf16.msra.mxu1 %v1337_v34  ;;  %v298_v55 = vld [vmem:[#allocation5 + $0x780] sm:$0xff]  ;;  %v1407_v56 = vpack.c.bf16 %v305_v49, %v299_v48  ;;  %v304_v57 = vld [vmem:[#allocation5 + $0x7b0] sm:$0xff]  ;;  %v119_v58 = vld [vmem:[#allocation5 + $0x1e8] sm:$0xff]  ;;  %v1345_v62 = vpack.c.bf16 %v112_v54, %v106_v53 }
  0x44   :  { %1402 = vmatpush1.bf16.msra.mxu0 %v1401_v38  ;;  %1340 = vmatprep.subr.bf16.mxu1 %v1339_v39  ;;  %v125_v59 = vld [vmem:[#allocation5 + $0x218] sm:$0xff]  ;;  %v311_v60 = vld [vmem:[#allocation5 + $0x7e8] sm:$0xff]  ;;  %v1409_v63 = vpack.c.bf16 %v304_v57, %v298_v55  ;;  %v118_v1 = vld [vmem:[#allocation5 + $0x1e0] sm:$0xff] }
  0x45   :  { %1404 = vmatprep.subr.bf16.mxu0 %v1403_v43  ;;  %v317_v61 = vld [vmem:[#allocation5 + $0x818] sm:$0xff]  ;;  %v1347_v0 = vpack.c.bf16 %v125_v59, %v119_v58  ;;  %v124_v2 = vld [vmem:[#allocation5 + $0x210] sm:$0xff]  ;;  %v310_v3 = vld [vmem:[#allocation5 + $0x7e0] sm:$0xff] }
  0x46   :  { %v1411_v4 = vpack.c.bf16 %v317_v61, %v311_v60  ;;  %v316_v5 = vld [vmem:[#allocation5 + $0x810] sm:$0xff]  ;;  %v131_v6 = vld [vmem:[#allocation5 + $0x248] sm:$0xff]  ;;  %v137_v7 = vld [vmem:[#allocation5 + $0x278] sm:$0xff]  ;;  %v1349_v10 = vpack.c.bf16 %v124_v2, %v118_v1 }
  0x47   :  { %1342 = vmatpush1.bf16.msra.mxu1 %v1341_v50  ;;  %v323_v8 = vld [vmem:[#allocation5 + $0x848] sm:$0xff]  ;;  %v329_v9 = vld [vmem:[#allocation5 + $0x878] sm:$0xff]  ;;  %v1413_v11 = vpack.c.bf16 %v316_v5, %v310_v3  ;;  %v1351_v12 = vpack.c.bf16 %v137_v7, %v131_v6  ;;  %v130_v13 = vld [vmem:[#allocation5 + $0x240] sm:$0xff] }
  0x48   :  { %1406 = vmatpush1.bf16.msra.mxu0 %v1405_v51  ;;  %1344 = vmatprep.subr.bf16.mxu1 %v1343_v52  ;;  %v136_v14 = vld [vmem:[#allocation5 + $0x270] sm:$0xff]  ;;  %v322_v15 = vld [vmem:[#allocation5 + $0x840] sm:$0xff]  ;;  %v1415_v16 = vpack.c.bf16 %v329_v9, %v323_v8  ;;  %v143_v18 = vld [vmem:[#allocation5 + $0x2a8] sm:$0xff] }
  0x49   :  { %1408 = vmatprep.subr.bf16.mxu0 %v1407_v56  ;;  %v328_v17 = vld [vmem:[#allocation5 + $0x870] sm:$0xff]  ;;  %v149_v19 = vld [vmem:[#allocation5 + $0x2d8] sm:$0xff]  ;;  %v335_v20 = vld [vmem:[#allocation5 + $0x8a8] sm:$0xff]  ;;  %v1353_v22 = vpack.c.bf16 %v136_v14, %v130_v13 }
  0x4a   :  { %v341_v21 = vld [vmem:[#allocation5 + $0x8d8] sm:$0xff]  ;;  %v1417_v23 = vpack.c.bf16 %v328_v17, %v322_v15  ;;  %v1355_v24 = vpack.c.bf16 %v149_v19, %v143_v18  ;;  %v142_v25 = vld [vmem:[#allocation5 + $0x2a0] sm:$0xff]  ;;  %v148_v26 = vld [vmem:[#allocation5 + $0x2d0] sm:$0xff] }
  0x4b   :  { %1346 = vmatpush1.bf16.msra.mxu1 %v1345_v62  ;;  %v334_v27 = vld [vmem:[#allocation5 + $0x8a0] sm:$0xff]  ;;  %v1419_v28 = vpack.c.bf16 %v341_v21, %v335_v20  ;;  %v340_v29 = vld [vmem:[#allocation5 + $0x8d0] sm:$0xff]  ;;  %v155_v30 = vld [vmem:[#allocation5 + $0x308] sm:$0xff]  ;;  %v1357_v34 = vpack.c.bf16 %v148_v26, %v142_v25 }
  0x4c   :  { %1410 = vmatpush1.bf16.msra.mxu0 %v1409_v63  ;;  %1348 = vmatprep.subr.bf16.mxu1 %v1347_v0  ;;  %v161_v31 = vld [vmem:[#allocation5 + $0x338] sm:$0xff]  ;;  %v347_v32 = vld [vmem:[#allocation5 + $0x908] sm:$0xff]  ;;  %v1421_v35 = vpack.c.bf16 %v340_v29, %v334_v27  ;;  %v154_v37 = vld [vmem:[#allocation5 + $0x300] sm:$0xff] }
  0x4d   :  { %1412 = vmatprep.subr.bf16.mxu0 %v1411_v4  ;;  %v353_v33 = vld [vmem:[#allocation5 + $0x938] sm:$0xff]  ;;  %v1359_v36 = vpack.c.bf16 %v161_v31, %v155_v30  ;;  %v160_v38 = vld [vmem:[#allocation5 + $0x330] sm:$0xff]  ;;  %v346_v39 = vld [vmem:[#allocation5 + $0x900] sm:$0xff] }
  0x4e   :  { %v1423_v40 = vpack.c.bf16 %v353_v33, %v347_v32  ;;  %v352_v41 = vld [vmem:[#allocation5 + $0x930] sm:$0xff]  ;;  %v167_v42 = vld [vmem:[#allocation5 + $0x368] sm:$0xff]  ;;  %v173_v43 = vld [vmem:[#allocation5 + $0x398] sm:$0xff]  ;;  %v1361_v46 = vpack.c.bf16 %v160_v38, %v154_v37 }
  0x4f   :  { %1350 = vmatpush1.bf16.msra.mxu1 %v1349_v10  ;;  %v359_v44 = vld [vmem:[#allocation5 + $0x968] sm:$0xff]  ;;  %v365_v45 = vld [vmem:[#allocation5 + $0x998] sm:$0xff]  ;;  %v1425_v47 = vpack.c.bf16 %v352_v41, %v346_v39  ;;  %v1363_v48 = vpack.c.bf16 %v173_v43, %v167_v42  ;;  %v166_v49 = vld [vmem:[#allocation5 + $0x360] sm:$0xff] }
  0x50   :  { %1414 = vmatpush1.bf16.msra.mxu0 %v1413_v11  ;;  %1352 = vmatprep.subr.bf16.mxu1 %v1351_v12  ;;  %v172_v50 = vld [vmem:[#allocation5 + $0x390] sm:$0xff]  ;;  %v358_v51 = vld [vmem:[#allocation5 + $0x960] sm:$0xff]  ;;  %v1427_v52 = vpack.c.bf16 %v365_v45, %v359_v44  ;;  %v179_v54 = vld [vmem:[#allocation5 + $0x3c8] sm:$0xff] }
  0x51   :  { %1416 = vmatprep.subr.bf16.mxu0 %v1415_v16  ;;  %v364_v53 = vld [vmem:[#allocation5 + $0x990] sm:$0xff]  ;;  %v185_v55 = vld [vmem:[#allocation5 + $0x3f8] sm:$0xff]  ;;  %v371_v56 = vld [vmem:[#allocation5 + $0x9c8] sm:$0xff]  ;;  %v1365_v58 = vpack.c.bf16 %v172_v50, %v166_v49 }
  0x52   :  { %v377_v57 = vld [vmem:[#allocation5 + $0x9f8] sm:$0xff]  ;;  %v1429_v59 = vpack.c.bf16 %v364_v53, %v358_v51  ;;  %v1367_v60 = vpack.c.bf16 %v185_v55, %v179_v54  ;;  %v178_v61 = vld [vmem:[#allocation5 + $0x3c0] sm:$0xff]  ;;  %v184_v62 = vld [vmem:[#allocation5 + $0x3f0] sm:$0xff] }
  0x53   :  { %1354 = vmatpush1.bf16.msra.mxu1 %v1353_v22  ;;  %v370_v63 = vld [vmem:[#allocation5 + $0x9c0] sm:$0xff]  ;;  %v1431_v0 = vpack.c.bf16 %v377_v57, %v371_v56  ;;  %v376_v1 = vld [vmem:[#allocation5 + $0x9f0] sm:$0xff]  ;;  %v191_v2 = vld [vmem:[#allocation5 + $0x428] sm:$0xff]  ;;  %v1369_v6 = vpack.c.bf16 %v184_v62, %v178_v61 }
  0x54   :  { %1418 = vmatpush1.bf16.msra.mxu0 %v1417_v23  ;;  %1356 = vmatprep.subr.bf16.mxu1 %v1355_v24  ;;  %v197_v3 = vld [vmem:[#allocation5 + $0x458] sm:$0xff]  ;;  %v383_v4 = vld [vmem:[#allocation5 + $0xa28] sm:$0xff]  ;;  %v190_v7 = vld [vmem:[#allocation5 + $0x420] sm:$0xff]  ;;  %v1433_v8 = vpack.c.bf16 %v376_v1, %v370_v63 }
  0x55   :  { %1420 = vmatprep.subr.bf16.mxu0 %v1419_v28  ;;  %v389_v5 = vld [vmem:[#allocation5 + $0xa58] sm:$0xff]  ;;  %v1371_v9 = vpack.c.bf16 %v197_v3, %v191_v2  ;;  %v196_v10 = vld [vmem:[#allocation5 + $0x450] sm:$0xff]  ;;  %v382_v11 = vld [vmem:[#allocation5 + $0xa20] sm:$0xff] }
  0x56   :  { %v388_v12 = vld [vmem:[#allocation5 + $0xa50] sm:$0xff]  ;;  %v1435_v13 = vpack.c.bf16 %v389_v5, %v383_v4  ;;  %v203_v14 = vld [vmem:[#allocation5 + $0x488] sm:$0xff]  ;;  %v209_v15 = vld [vmem:[#allocation5 + $0x4b8] sm:$0xff]  ;;  %v1373_v20 = vpack.c.bf16 %v196_v10, %v190_v7 }
  0x57   :  { %1358 = vmatpush1.bf16.msra.mxu1 %v1357_v34  ;;  %v2088_v16 = vld [vmem:[#allocation2 + $0x8] sm:$0xff]  ;;  %v395_v17 = vld [vmem:[#allocation5 + $0xa88] sm:$0xff]  ;;  %v1437_v21 = vpack.c.bf16 %v388_v12, %v382_v11  ;;  %v1375_v22 = vpack.c.bf16 %v209_v15, %v203_v14  ;;  %v202_v23 = vld [vmem:[#allocation5 + $0x480] sm:$0xff] }
  0x58   :  { %1422 = vmatpush1.bf16.msra.mxu0 %v1421_v35  ;;  %1360 = vmatprep.subr.bf16.mxu1 %v1359_v36  ;;  %v401_v18 = vld [vmem:[#allocation5 + $0xab8] sm:$0xff]  ;;  %v2091_v19 = vld [vmem:[#allocation2 + $0x18] sm:$0xff]  ;;  %v208_v24 = vld [vmem:[#allocation5 + $0x4b0] sm:$0xff] }
  0x59   :  { %1424 = vmatprep.subr.bf16.mxu0 %v1423_v40  ;;  %730 = vmatprep.mubr.f32.mxu1 %v2088_v16  ;;  %v394_v25 = vld [vmem:[#allocation5 + $0xa80] sm:$0xff]  ;;  %v1439_v26 = vpack.c.bf16 %v401_v18, %v395_v17  ;;  %v400_v27 = vld [vmem:[#allocation5 + $0xab0] sm:$0xff]  ;;  %v215_v28 = vld [vmem:[#allocation5 + $0x4e8] sm:$0xff]  ;;  %v1377_v32 = vpack.c.bf16 %v208_v24, %v202_v23 }
  0x5a   :  { %801 = vmatprep.mubr.f32.mxu0 %v2091_v19  ;;  %v221_v29 = vld [vmem:[#allocation5 + $0x518] sm:$0xff]  ;;  %v407_v30 = vld [vmem:[#allocation5 + $0xae8] sm:$0xff]  ;;  %v1441_v33 = vpack.c.bf16 %v400_v27, %v394_v25  ;;  %v214_v35 = vld [vmem:[#allocation5 + $0x4e0] sm:$0xff] }
  0x5b   :  { %1362 = vmatpush1.bf16.msra.mxu1 %v1361_v46  ;;  %v413_v31 = vld [vmem:[#allocation5 + $0xb18] sm:$0xff]  ;;  %v1379_v34 = vpack.c.bf16 %v221_v29, %v215_v28  ;;  %v220_v36 = vld [vmem:[#allocation5 + $0x510] sm:$0xff]  ;;  %v406_v37 = vld [vmem:[#allocation5 + $0xae0] sm:$0xff] }
  0x5c   :  { %1426 = vmatpush1.bf16.msra.mxu0 %v1425_v47  ;;  %1364 = vmatprep.subr.bf16.mxu1 %v1363_v48  ;;  %v1443_v38 = vpack.c.bf16 %v413_v31, %v407_v30  ;;  %v412_v39 = vld [vmem:[#allocation5 + $0xb10] sm:$0xff]  ;;  %v227_v40 = vld [vmem:[#allocation5 + $0x548] sm:$0xff]  ;;  %v233_v41 = vld [vmem:[#allocation5 + $0x578] sm:$0xff]  ;;  %v1381_v44 = vpack.c.bf16 %v220_v36, %v214_v35 }
  0x5d   :  { %1428 = vmatprep.subr.bf16.mxu0 %v1427_v52  ;;  %v419_v42 = vld [vmem:[#allocation5 + $0xb48] sm:$0xff]  ;;  %v425_v43 = vld [vmem:[#allocation5 + $0xb78] sm:$0xff]  ;;  %v1445_v45 = vpack.c.bf16 %v412_v39, %v406_v37  ;;  %v1383_v46 = vpack.c.bf16 %v233_v41, %v227_v40  ;;  %v226_v47 = vld [vmem:[#allocation5 + $0x540] sm:$0xff] }
  0x5e   :  { %v232_v48 = vld [vmem:[#allocation5 + $0x570] sm:$0xff]  ;;  %v418_v49 = vld [vmem:[#allocation5 + $0xb40] sm:$0xff]  ;;  %v1447_v50 = vpack.c.bf16 %v425_v43, %v419_v42  ;;  %v239_v52 = vld [vmem:[#allocation5 + $0x5a8] sm:$0xff] }
  0x5f   :  { %1366 = vmatpush1.bf16.msra.mxu1 %v1365_v58  ;;  %v424_v51 = vld [vmem:[#allocation5 + $0xb70] sm:$0xff]  ;;  %v245_v53 = vld [vmem:[#allocation5 + $0x5d8] sm:$0xff]  ;;  %v431_v54 = vld [vmem:[#allocation5 + $0xba8] sm:$0xff]  ;;  %v1385_v56 = vpack.c.bf16 %v232_v48, %v226_v47 }
  0x60   :  { %1430 = vmatpush1.bf16.msra.mxu0 %v1429_v59  ;;  %1368 = vmatprep.subr.bf16.mxu1 %v1367_v60  ;;  %v437_v55 = vld [vmem:[#allocation5 + $0xbd8] sm:$0xff]  ;;  %v1449_v57 = vpack.c.bf16 %v424_v51, %v418_v49  ;;  %v1387_v58 = vpack.c.bf16 %v245_v53, %v239_v52  ;;  %v238_v59 = vld [vmem:[#allocation5 + $0x5a0] sm:$0xff]  ;;  %v244_v60 = vld [vmem:[#allocation5 + $0x5d0] sm:$0xff] }
  0x61   :  { %1432 = vmatprep.subr.bf16.mxu0 %v1431_v0  ;;  %v430_v61 = vld [vmem:[#allocation5 + $0xba0] sm:$0xff]  ;;  %v1451_v62 = vpack.c.bf16 %v437_v55, %v431_v54  ;;  %v436_v63 = vld [vmem:[#allocation5 + $0xbd0] sm:$0xff]  ;;  %v61_v0 = vld [vmem:[#allocation5 + $0x18] sm:$0xff]  ;;  %v1389_v4 = vpack.c.bf16 %v244_v60, %v238_v59 }
  0x62   :  { %v67_v1 = vld [vmem:[#allocation5 + $0x48] sm:$0xff]  ;;  %v449_v3 = vld [vmem:[#allocation5 + $0xc38] sm:$0xff]  ;;  %v1453_v5 = vpack.c.bf16 %v436_v63, %v430_v61  ;;  %v442_v7 = vld [vmem:[#allocation5 + $0xc00] sm:$0xff] }
  0x63   :  { %1370 = vmatpush1.bf16.msra.mxu1 %v1369_v6  ;;  %v443_v2 = vld [vmem:[#allocation5 + $0xc08] sm:$0xff]  ;;  %v1519_v6 = vpack.c.bf16 %v67_v1, %v61_v0  ;;  %v448_v11 = vld [vmem:[#allocation5 + $0xc30] sm:$0xff]  ;;  %v73_v12 = vld [vmem:[#allocation5 + $0x78] sm:$0xff] }
  0x64   :  { %1434 = vmatpush1.bf16.msra.mxu0 %v1433_v8  ;;  %1372 = vmatprep.subr.bf16.mxu1 %v1371_v9  ;;  %v60_v8 = vld [vmem:[#allocation5 + $0x10] sm:$0xff]  ;;  %v66_v9 = vld [vmem:[#allocation5 + $0x40] sm:$0xff]  ;;  %v1455_v10 = vpack.c.bf16 %v449_v3, %v443_v2  ;;  %v455_v14 = vld [vmem:[#allocation5 + $0xc68] sm:$0xff] }
  0x65   :  { %1436 = vmatprep.subr.bf16.mxu0 %v1435_v13  ;;  %v79_v13 = vld [vmem:[#allocation5 + $0xa8] sm:$0xff]  ;;  %v461_v15 = vld [vmem:[#allocation5 + $0xc98] sm:$0xff]  ;;  %v2094_v17 = vld [vmem:[#allocation2] sm:$0xff] }
  0x66   :  { %v54_v18 = vld [vmem:[#allocation2 + $0x10] sm:$0xff]  ;;  %v72_v24 = vld [vmem:[#allocation5 + $0x70] sm:$0xff]  ;;  %v85_v28 = vld [vmem:[#allocation5 + $0xd8] sm:$0xff] }
  0x67   :  { %1374 = vmatpush1.bf16.msra.mxu1 %v1373_v20  ;;  %v1521_v20 = vpack.c.bf16 %v66_v9, %v60_v8  ;;  %v454_v23 = vld [vmem:[#allocation5 + $0xc60] sm:$0xff]  ;;  %v460_v27 = vld [vmem:[#allocation5 + $0xc90] sm:$0xff]  ;;  %v91_v29 = vld [vmem:[#allocation5 + $0x108] sm:$0xff] }
  0x68   :  { %1438 = vmatpush1.bf16.msra.mxu0 %v1437_v21  ;;  %1376 = vmatprep.subr.bf16.mxu1 %v1375_v22  ;;  %v1457_v21 = vpack.c.bf16 %v448_v11, %v442_v7  ;;  %v1523_v22 = vpack.c.bf16 %v79_v13, %v73_v12  ;;  %v78_v25 = vld [vmem:[#allocation5 + $0xa0] sm:$0xff]  ;;  %v467_v30 = vld [vmem:[#allocation5 + $0xcc8] sm:$0xff]  ;;  %v473_v31 = vld [vmem:[#allocation5 + $0xcf8] sm:$0xff] }
  0x69   :  { %1440 = vmatprep.subr.bf16.mxu0 %v1439_v26  ;;  %v1459_v26 = vpack.c.bf16 %v461_v15, %v455_v14  ;;  %v466_v35 = vld [vmem:[#allocation5 + $0xcc0] sm:$0xff]  ;;  %v84_v36 = vld [vmem:[#allocation5 + $0xd0] sm:$0xff]  ;;  %v97_v40 = vld [vmem:[#allocation5 + $0x138] sm:$0xff] }
  0x6a   :  { %v90_v37 = vld [vmem:[#allocation5 + $0x100] sm:$0xff]  ;;  %v472_v39 = vld [vmem:[#allocation5 + $0xcf0] sm:$0xff]  ;;  %v103_v41 = vld [vmem:[#allocation5 + $0x168] sm:$0xff] }
  0x6b   :  { %1378 = vmatpush1.bf16.msra.mxu1 %v1377_v32  ;;  %v1525_v32 = vpack.c.bf16 %v78_v25, %v72_v24  ;;  %v479_v42 = vld [vmem:[#allocation5 + $0xd28] sm:$0xff]  ;;  %v485_v43 = vld [vmem:[#allocation5 + $0xd58] sm:$0xff]  ;;  %v478_v47 = vld [vmem:[#allocation5 + $0xd20] sm:$0xff] }
  0x6c   :  { %1442 = vmatpush1.bf16.msra.mxu0 %v1441_v33  ;;  %1380 = vmatprep.subr.bf16.mxu1 %v1379_v34  ;;  %v1461_v33 = vpack.c.bf16 %v460_v27, %v454_v23  ;;  %v1527_v34 = vpack.c.bf16 %v91_v29, %v85_v28  ;;  %v96_v48 = vld [vmem:[#allocation5 + $0x130] sm:$0xff]  ;;  %v102_v49 = vld [vmem:[#allocation5 + $0x160] sm:$0xff]  ;;  %v109_v52 = vld [vmem:[#allocation5 + $0x198] sm:$0xff] }
  0x6d   :  { %1444 = vmatprep.subr.bf16.mxu0 %v1443_v38  ;;  %v1463_v38 = vpack.c.bf16 %v473_v31, %v467_v30  ;;  %v484_v51 = vld [vmem:[#allocation5 + $0xd50] sm:$0xff]  ;;  %v115_v53 = vld [vmem:[#allocation5 + $0x1c8] sm:$0xff]  ;;  %v497_v55 = vld [vmem:[#allocation5 + $0xdb8] sm:$0xff] }
  0x6e   :  { %v491_v54 = vld [vmem:[#allocation5 + $0xd88] sm:$0xff]  ;;  %v490_v59 = vld [vmem:[#allocation5 + $0xd80] sm:$0xff]  ;;  %v108_v60 = vld [vmem:[#allocation5 + $0x190] sm:$0xff] }
  0x6f   :  { %1382 = vmatpush1.bf16.msra.mxu1 %v1381_v44  ;;  %v1529_v44 = vpack.c.bf16 %v90_v37, %v84_v36  ;;  %v114_v61 = vld [vmem:[#allocation5 + $0x1c0] sm:$0xff]  ;;  %v496_v63 = vld [vmem:[#allocation5 + $0xdb0] sm:$0xff]  ;;  %v121_v0 = vld [vmem:[#allocation5 + $0x1f8] sm:$0xff] }
  0x70   :  { %1446 = vmatpush1.bf16.msra.mxu0 %v1445_v45  ;;  %1384 = vmatprep.subr.bf16.mxu1 %v1383_v46  ;;  %v1465_v45 = vpack.c.bf16 %v472_v39, %v466_v35  ;;  %v1531_v46 = vpack.c.bf16 %v103_v41, %v97_v40  ;;  %v127_v1 = vld [vmem:[#allocation5 + $0x228] sm:$0xff]  ;;  %v509_v3 = vld [vmem:[#allocation5 + $0xe18] sm:$0xff]  ;;  %v502_v7 = vld [vmem:[#allocation5 + $0xde0] sm:$0xff] }
  0x71   :  { %1448 = vmatprep.subr.bf16.mxu0 %v1447_v50  ;;  %v1467_v50 = vpack.c.bf16 %v485_v43, %v479_v42  ;;  %v503_v2 = vld [vmem:[#allocation5 + $0xde8] sm:$0xff]  ;;  %v120_v8 = vld [vmem:[#allocation5 + $0x1f0] sm:$0xff]  ;;  %v126_v9 = vld [vmem:[#allocation5 + $0x220] sm:$0xff] }
  0x72   :  { %v508_v11 = vld [vmem:[#allocation5 + $0xe10] sm:$0xff]  ;;  %v133_v12 = vld [vmem:[#allocation5 + $0x258] sm:$0xff]  ;;  %v139_v13 = vld [vmem:[#allocation5 + $0x288] sm:$0xff] }
  0x73   :  { %1386 = vmatpush1.bf16.msra.mxu1 %v1385_v56  ;;  %v1533_v56 = vpack.c.bf16 %v102_v49, %v96_v48  ;;  %v515_v14 = vld [vmem:[#allocation5 + $0xe48] sm:$0xff]  ;;  %v521_v15 = vld [vmem:[#allocation5 + $0xe78] sm:$0xff]  ;;  %v520_v23 = vld [vmem:[#allocation5 + $0xe70] sm:$0xff] }
  0x74   :  { %1450 = vmatpush1.bf16.msra.mxu0 %v1449_v57  ;;  %1388 = vmatprep.subr.bf16.mxu1 %v1387_v58  ;;  %v1469_v57 = vpack.c.bf16 %v484_v51, %v478_v47  ;;  %v1535_v58 = vpack.c.bf16 %v115_v53, %v109_v52  ;;  %v132_v24 = vld [vmem:[#allocation5 + $0x250] sm:$0xff]  ;;  %v138_v25 = vld [vmem:[#allocation5 + $0x280] sm:$0xff]  ;;  %v145_v27 = vld [vmem:[#allocation5 + $0x2b8] sm:$0xff] }
  0x75   :  { %1452 = vmatprep.subr.bf16.mxu0 %v1451_v62  ;;  %v1471_v62 = vpack.c.bf16 %v497_v55, %v491_v54  ;;  %v151_v28 = vld [vmem:[#allocation5 + $0x2e8] sm:$0xff]  ;;  %v2098_v29 = vld [vmem:[#allocation2 + $0x28] sm:$0xff]  ;;  %v526_v35 = vld [vmem:[#allocation5 + $0xea0] sm:$0xff] }
  0x76   :  { %v527_v30 = vld [vmem:[#allocation5 + $0xea8] sm:$0xff]  ;;  %v533_v31 = vld [vmem:[#allocation5 + $0xed8] sm:$0xff]  ;;  %v144_v36 = vld [vmem:[#allocation5 + $0x2b0] sm:$0xff] }
  0x77   :  { %1390 = vmatpush1.bf16.msra.mxu1 %v1389_v4  ;;  %v1537_v4 = vpack.c.bf16 %v114_v61, %v108_v60  ;;  %v150_v37 = vld [vmem:[#allocation5 + $0x2e0] sm:$0xff]  ;;  %v532_v39 = vld [vmem:[#allocation5 + $0xed0] sm:$0xff]  ;;  %v157_v40 = vld [vmem:[#allocation5 + $0x318] sm:$0xff] }
  0x78   :  { %1454 = vmatpush1.bf16.msra.mxu0 %v1453_v5  ;;  %1520 = vmatprep.subr.bf16.mxu1 %v1519_v6  ;;  %v1473_v5 = vpack.c.bf16 %v496_v63, %v490_v59  ;;  %v1539_v6 = vpack.c.bf16 %v127_v1, %v121_v0  ;;  %v163_v41 = vld [vmem:[#allocation5 + $0x348] sm:$0xff]  ;;  %v545_v43 = vld [vmem:[#allocation5 + $0xf38] sm:$0xff]  ;;  %v538_v47 = vld [vmem:[#allocation5 + $0xf00] sm:$0xff] }
  0x79   :  { %1456 = vmatprep.subr.bf16.mxu0 %v1455_v10  ;;  %v1475_v10 = vpack.c.bf16 %v509_v3, %v503_v2  ;;  %v539_v42 = vld [vmem:[#allocation5 + $0xf08] sm:$0xff]  ;;  %v156_v48 = vld [vmem:[#allocation5 + $0x310] sm:$0xff]  ;;  %v162_v49 = vld [vmem:[#allocation5 + $0x340] sm:$0xff] }
  0x7a   :  { %731 = vmatmul.mubr.f32.vlgmr.msra.gmra.mrb[0].mxu1 %v2094_v17  ;;  %v544_v51 = vld [vmem:[#allocation5 + $0xf30] sm:$0xff]  ;;  %v169_v52 = vld [vmem:[#allocation5 + $0x378] sm:$0xff]  ;;  %v175_v53 = vld [vmem:[#allocation5 + $0x3a8] sm:$0xff] }
  0x7b   :  { %802 = vmatmul.mubr.f32.vlgmr.msra.gmra.mrb[0].mxu0 %v54_v18  ;;  %1522 = vmatpush1.bf16.msra.mxu1 %v1521_v20  ;;  %v1541_v18 = vpack.c.bf16 %v126_v9, %v120_v8  ;;  %v514_v20 = vld [vmem:[#allocation5 + $0xe40] sm:$0xff]  ;;  %v551_v54 = vld [vmem:[#allocation5 + $0xf68] sm:$0xff]  ;;  %v557_v55 = vld [vmem:[#allocation5 + $0xf98] sm:$0xff] }
  0x7c   :  { %1458 = vmatpush1.bf16.msra.mxu0 %v1457_v21  ;;  %1524 = vmatprep.subr.bf16.mxu1 %v1523_v22  ;;  %v1477_v21 = vpack.c.bf16 %v508_v11, %v502_v7  ;;  %v1543_v22 = vpack.c.bf16 %v139_v13, %v133_v12  ;;  %v550_v59 = vld [vmem:[#allocation5 + $0xf60] sm:$0xff]  ;;  %v168_v60 = vld [vmem:[#allocation5 + $0x370] sm:$0xff]  ;;  %v181_v0 = vld [vmem:[#allocation5 + $0x3d8] sm:$0xff] }
  0x7d   :  { %1460 = vmatprep.subr.bf16.mxu0 %v1459_v26  ;;  %943 = vmatprep.mubr.f32.mxu1 %v2088_v16  ;;  %v1479_v26 = vpack.c.bf16 %v521_v15, %v515_v14  ;;  %v174_v61 = vld [vmem:[#allocation5 + $0x3a0] sm:$0xff]  ;;  %v556_v63 = vld [vmem:[#allocation5 + $0xf90] sm:$0xff]  ;;  %v187_v1 = vld [vmem:[#allocation5 + $0x408] sm:$0xff] }
  0x7e   :  { %872 = vmatprep.mubr.f32.mxu0 %v2098_v29  ;;  %v563_v2 = vld [vmem:[#allocation5 + $0xfc8] sm:$0xff]  ;;  %v569_v3 = vld [vmem:[#allocation5 + $0xff8] sm:$0xff]  ;;  %v562_v7 = vld [vmem:[#allocation5 + $0xfc0] sm:$0xff] }
  0x7f   :  { %1526 = vmatpush1.bf16.msra.mxu1 %v1525_v32  ;;  %v1545_v32 = vpack.c.bf16 %v138_v25, %v132_v24  ;;  %v180_v8 = vld [vmem:[#allocation5 + $0x3d0] sm:$0xff]  ;;  %v186_v9 = vld [vmem:[#allocation5 + $0x400] sm:$0xff]  ;;  %v193_v12 = vld [vmem:[#allocation5 + $0x438] sm:$0xff] }
  0x80   :  { %1462 = vmatpush1.bf16.msra.mxu0 %v1461_v33  ;;  %1528 = vmatprep.subr.bf16.mxu1 %v1527_v34  ;;  %v1481_v33 = vpack.c.bf16 %v520_v23, %v514_v20  ;;  %v1547_v34 = vpack.c.bf16 %v151_v28, %v145_v27  ;;  %v568_v11 = vld [vmem:[#allocation5 + $0xff0] sm:$0xff]  ;;  %v199_v13 = vld [vmem:[#allocation5 + $0x468] sm:$0xff]  ;;  %v581_v15 = vld [vmem:[#allocation5 + $0x1058] sm:$0xff] }
  0x81   :  { %1464 = vmatprep.subr.bf16.mxu0 %v1463_v38  ;;  %v1483_v38 = vpack.c.bf16 %v533_v31, %v527_v30  ;;  %v575_v14 = vld [vmem:[#allocation5 + $0x1028] sm:$0xff]  ;;  %v1497_v20 = vpack.c.bf16 %v568_v11, %v562_v7  ;;  %v192_v23 = vld [vmem:[#allocation5 + $0x430] sm:$0xff]  ;;  %v198_v24 = vld [vmem:[#allocation5 + $0x460] sm:$0xff] }
  0x82   :  { %v1499_v25 = vpack.c.bf16 %v581_v15, %v575_v14  ;;  %v205_v27 = vld [vmem:[#allocation5 + $0x498] sm:$0xff]  ;;  %v211_v28 = vld [vmem:[#allocation5 + $0x4c8] sm:$0xff]  ;;  %v622_v7 = vld [vmem:[#allocation5 + $0x11a0] sm:$0xff] }
  0x83   :  { %1530 = vmatpush1.bf16.msra.mxu1 %v1529_v44  ;;  %v1549_v44 = vpack.c.bf16 %v150_v37, %v144_v36  ;;  %v587_v30 = vld [vmem:[#allocation5 + $0x1088] sm:$0xff]  ;;  %v593_v31 = vld [vmem:[#allocation5 + $0x10b8] sm:$0xff]  ;;  %v204_v36 = vld [vmem:[#allocation5 + $0x490] sm:$0xff] }
  0x84   :  { %1466 = vmatpush1.bf16.msra.mxu0 %v1465_v45  ;;  %1532 = vmatprep.subr.bf16.mxu1 %v1531_v46  ;;  %v1485_v45 = vpack.c.bf16 %v532_v39, %v526_v35  ;;  %v1551_v46 = vpack.c.bf16 %v163_v41, %v157_v40  ;;  %v586_v35 = vld [vmem:[#allocation5 + $0x1080] sm:$0xff]  ;;  %v592_v39 = vld [vmem:[#allocation5 + $0x10b0] sm:$0xff]  ;;  %v217_v40 = vld [vmem:[#allocation5 + $0x4f8] sm:$0xff] }
  0x85   :  { %1468 = vmatprep.subr.bf16.mxu0 %v1467_v50  ;;  %v1487_v50 = vpack.c.bf16 %v545_v43, %v539_v42  ;;  %v210_v37 = vld [vmem:[#allocation5 + $0x4c0] sm:$0xff]  ;;  %v223_v41 = vld [vmem:[#allocation5 + $0x528] sm:$0xff]  ;;  %v605_v43 = vld [vmem:[#allocation5 + $0x1118] sm:$0xff] }
  0x86   :  { %v599_v42 = vld [vmem:[#allocation5 + $0x10e8] sm:$0xff]  ;;  %v628_v11 = vld [vmem:[#allocation5 + $0x11d0] sm:$0xff]  ;;  %v69_v15 = vld [vmem:[#allocation5 + $0x58] sm:$0xff] }
  0x87   :  { %1534 = vmatpush1.bf16.msra.mxu1 %v1533_v56  ;;  %v1553_v56 = vpack.c.bf16 %v162_v49, %v156_v48  ;;  %v216_v48 = vld [vmem:[#allocation5 + $0x4f0] sm:$0xff]  ;;  %v222_v49 = vld [vmem:[#allocation5 + $0x520] sm:$0xff]  ;;  %v63_v14 = vld [vmem:[#allocation5 + $0x28] sm:$0xff] }
  0x88   :  { %1470 = vmatpush1.bf16.msra.mxu0 %v1469_v57  ;;  %1536 = vmatprep.subr.bf16.mxu1 %v1535_v58  ;;  %v1489_v57 = vpack.c.bf16 %v544_v51, %v538_v47  ;;  %v1555_v58 = vpack.c.bf16 %v175_v53, %v169_v52  ;;  %v598_v47 = vld [vmem:[#allocation5 + $0x10e0] sm:$0xff]  ;;  %v604_v51 = vld [vmem:[#allocation5 + $0x1110] sm:$0xff]  ;;  %v229_v52 = vld [vmem:[#allocation5 + $0x558] sm:$0xff] }
  0x89   :  { %1472 = vmatprep.subr.bf16.mxu0 %v1471_v62  ;;  %v1491_v62 = vpack.c.bf16 %v557_v55, %v551_v54  ;;  %v235_v53 = vld [vmem:[#allocation5 + $0x588] sm:$0xff]  ;;  %v617_v55 = vld [vmem:[#allocation5 + $0x1178] sm:$0xff] }
  0x8a   :  { %v611_v54 = vld [vmem:[#allocation5 + $0x1148] sm:$0xff] }
  0x8b   :  { %1538 = vmatpush1.bf16.msra.mxu1 %v1537_v4  ;;  %v1557_v4 = vpack.c.bf16 %v174_v61, %v168_v60  ;;  %v228_v60 = vld [vmem:[#allocation5 + $0x550] sm:$0xff]  ;;  %v234_v61 = vld [vmem:[#allocation5 + $0x580] sm:$0xff] }
  0x8c   :  { %1474 = vmatpush1.bf16.msra.mxu0 %v1473_v5  ;;  %1540 = vmatprep.subr.bf16.mxu1 %v1539_v6  ;;  %v1493_v5 = vpack.c.bf16 %v556_v63, %v550_v59  ;;  %v1559_v6 = vpack.c.bf16 %v187_v1, %v181_v0  ;;  %v610_v59 = vld [vmem:[#allocation5 + $0x1140] sm:$0xff]  ;;  %v616_v63 = vld [vmem:[#allocation5 + $0x1170] sm:$0xff]  ;;  %v241_v0 = vld [vmem:[#allocation5 + $0x5b8] sm:$0xff] }
  0x8d   :  { %1476 = vmatprep.subr.bf16.mxu0 %v1475_v10  ;;  %v1495_v10 = vpack.c.bf16 %v569_v3, %v563_v2  ;;  %v247_v1 = vld [vmem:[#allocation5 + $0x5e8] sm:$0xff]  ;;  %v629_v3 = vld [vmem:[#allocation5 + $0x11d8] sm:$0xff] }
  0x8e   :  { %v623_v2 = vld [vmem:[#allocation5 + $0x11a8] sm:$0xff] }
  0x8f   :  { %1542 = vmatpush1.bf16.msra.mxu1 %v1541_v18  ;;  %v1561_v18 = vpack.c.bf16 %v186_v9, %v180_v8  ;;  %v240_v8 = vld [vmem:[#allocation5 + $0x5b0] sm:$0xff]  ;;  %v246_v9 = vld [vmem:[#allocation5 + $0x5e0] sm:$0xff] }
  0x90   :  { %1478 = vmatpush1.bf16.msra.mxu0 %v1477_v21  ;;  %1544 = vmatprep.subr.bf16.mxu1 %v1543_v22  ;;  %v1563_v21 = vpack.c.bf16 %v199_v13, %v193_v12  ;;  %v574_v22 = vld [vmem:[#allocation5 + $0x1020] sm:$0xff]  ;;  %v253_v12 = vld [vmem:[#allocation5 + $0x618] sm:$0xff]  ;;  %v259_v13 = vld [vmem:[#allocation5 + $0x648] sm:$0xff] }
  0x91   :  { %1480 = vmatprep.subr.bf16.mxu0 %v1479_v26  ;;  %v580_v26 = vld [vmem:[#allocation5 + $0x1050] sm:$0xff] }
  0x93   :  { %1546 = vmatpush1.bf16.msra.mxu1 %v1545_v32  ;;  %v1565_v32 = vpack.c.bf16 %v198_v24, %v192_v23  ;;  %v258_v23 = vld [vmem:[#allocation5 + $0x640] sm:$0xff] }
  0x94   :  { %1482 = vmatpush1.bf16.msra.mxu0 %v1481_v33  ;;  %1548 = vmatprep.subr.bf16.mxu1 %v1547_v34  ;;  %v1501_v33 = vpack.c.bf16 %v580_v26, %v574_v22  ;;  %v1567_v34 = vpack.c.bf16 %v211_v28, %v205_v27  ;;  %v252_v22 = vld [vmem:[#allocation5 + $0x610] sm:$0xff]  ;;  %v62_v24 = vld [vmem:[#allocation5 + $0x20] sm:$0xff]  ;;  %v265_v27 = vld [vmem:[#allocation5 + $0x678] sm:$0xff] }
  0x95   :  { %1484 = vmatprep.subr.bf16.mxu0 %v1483_v38  ;;  %v1503_v38 = vpack.c.bf16 %v593_v31, %v587_v30  ;;  %v68_v26 = vld [vmem:[#allocation5 + $0x50] sm:$0xff]  ;;  %v271_v28 = vld [vmem:[#allocation5 + $0x6a8] sm:$0xff]  ;;  %v81_v31 = vld [vmem:[#allocation5 + $0xb8] sm:$0xff] }
  0x96   :  { %v75_v30 = vld [vmem:[#allocation5 + $0x88] sm:$0xff] }
  0x97   :  { %1550 = vmatpush1.bf16.msra.mxu1 %v1549_v44  ;;  %v1569_v44 = vpack.c.bf16 %v210_v37, %v204_v36  ;;  %v264_v36 = vld [vmem:[#allocation5 + $0x670] sm:$0xff]  ;;  %v270_v37 = vld [vmem:[#allocation5 + $0x6a0] sm:$0xff] }
  0x98   :  { %1486 = vmatpush1.bf16.msra.mxu0 %v1485_v45  ;;  %1552 = vmatprep.subr.bf16.mxu1 %v1551_v46  ;;  %v1505_v45 = vpack.c.bf16 %v592_v39, %v586_v35  ;;  %v1571_v46 = vpack.c.bf16 %v223_v41, %v217_v40  ;;  %v1587_v35 = vpack.c.bf16 %v271_v28, %v265_v27  ;;  %v80_v40 = vld [vmem:[#allocation5 + $0xb0] sm:$0xff]  ;;  %v277_v41 = vld [vmem:[#allocation5 + $0x6d8] sm:$0xff]  ;;  %v135_v27 = vld [vmem:[#allocation5 + $0x268] sm:$0xff] }
  0x99   :  { %1488 = vmatprep.subr.bf16.mxu0 %v1487_v50  ;;  %v1507_v50 = vpack.c.bf16 %v605_v43, %v599_v42  ;;  %v1715_v39 = vpack.c.bf16 %v81_v31, %v75_v30  ;;  %v283_v42 = vld [vmem:[#allocation5 + $0x708] sm:$0xff]  ;;  %v141_v28 = vld [vmem:[#allocation5 + $0x298] sm:$0xff] }
  0x9a   :  { %v87_v43 = vld [vmem:[#allocation5 + $0xe8] sm:$0xff] }
  0x9b   :  { %1554 = vmatpush1.bf16.msra.mxu1 %v1553_v56  ;;  %v1573_v56 = vpack.c.bf16 %v222_v49, %v216_v48  ;;  %v276_v48 = vld [vmem:[#allocation5 + $0x6d0] sm:$0xff]  ;;  %v282_v49 = vld [vmem:[#allocation5 + $0x700] sm:$0xff] }
  0x9c   :  { %1490 = vmatpush1.bf16.msra.mxu0 %v1489_v57  ;;  %1556 = vmatprep.subr.bf16.mxu1 %v1555_v58  ;;  %v1509_v57 = vpack.c.bf16 %v604_v51, %v598_v47  ;;  %v1575_v58 = vpack.c.bf16 %v235_v53, %v229_v52  ;;  %v1591_v47 = vpack.c.bf16 %v283_v42, %v277_v41  ;;  %v92_v52 = vld [vmem:[#allocation5 + $0x110] sm:$0xff]  ;;  %v289_v53 = vld [vmem:[#allocation5 + $0x738] sm:$0xff] }
  0x9d   :  { %1492 = vmatprep.subr.bf16.mxu0 %v1491_v62  ;;  %v1511_v62 = vpack.c.bf16 %v617_v55, %v611_v54  ;;  %v295_v54 = vld [vmem:[#allocation5 + $0x768] sm:$0xff]  ;;  %v105_v55 = vld [vmem:[#allocation5 + $0x178] sm:$0xff] }
  0x9e   :  { %v153_v41 = vld [vmem:[#allocation5 + $0x2f8] sm:$0xff] }
  0x9f   :  { %1558 = vmatpush1.bf16.msra.mxu1 %v1557_v4  ;;  %v1577_v4 = vpack.c.bf16 %v234_v61, %v228_v60  ;;  %v294_v60 = vld [vmem:[#allocation5 + $0x760] sm:$0xff] }
  0xa0   :  { %1494 = vmatpush1.bf16.msra.mxu0 %v1493_v5  ;;  %1560 = vmatprep.subr.bf16.mxu1 %v1559_v6  ;;  %v1513_v5 = vpack.c.bf16 %v616_v63, %v610_v59  ;;  %v1579_v6 = vpack.c.bf16 %v247_v1, %v241_v0  ;;  %v288_v59 = vld [vmem:[#allocation5 + $0x730] sm:$0xff]  ;;  %v98_v61 = vld [vmem:[#allocation5 + $0x140] sm:$0xff]  ;;  %v301_v0 = vld [vmem:[#allocation5 + $0x798] sm:$0xff] }
  0xa1   :  { %1496 = vmatprep.subr.bf16.mxu0 %v1495_v10  ;;  %v1515_v10 = vpack.c.bf16 %v629_v3, %v623_v2  ;;  %v104_v63 = vld [vmem:[#allocation5 + $0x170] sm:$0xff]  ;;  %v307_v1 = vld [vmem:[#allocation5 + $0x7c8] sm:$0xff]  ;;  %v1597_v3 = vpack.c.bf16 %v294_v60, %v288_v59 }
  0xa2   :  { %v111_v2 = vld [vmem:[#allocation5 + $0x1a8] sm:$0xff]  ;;  %v164_v60 = vld [vmem:[#allocation5 + $0x350] sm:$0xff] }
  0xa3   :  { %1562 = vmatpush1.bf16.msra.mxu1 %v1561_v18  ;;  %v1581_v18 = vpack.c.bf16 %v246_v9, %v240_v8  ;;  %v116_v9 = vld [vmem:[#allocation5 + $0x1d0] sm:$0xff] }
  0xa4   :  { %1498 = vmatpush1.bf16.msra.mxu0 %v1497_v20  ;;  %1564 = vmatprep.subr.bf16.mxu1 %v1563_v21  ;;  %v1517_v20 = vpack.c.bf16 %v628_v11, %v622_v7  ;;  %v1583_v21 = vpack.c.bf16 %v259_v13, %v253_v12  ;;  %v110_v7 = vld [vmem:[#allocation5 + $0x1a0] sm:$0xff]  ;;  %v319_v11 = vld [vmem:[#allocation5 + $0x828] sm:$0xff]  ;;  %v129_v13 = vld [vmem:[#allocation5 + $0x238] sm:$0xff] }
  0xa5   :  { %1500 = vmatprep.subr.bf16.mxu0 %v1499_v25  ;;  %v1711_v25 = vpack.c.bf16 %v69_v15, %v63_v14  ;;  %v123_v12 = vld [vmem:[#allocation5 + $0x208] sm:$0xff]  ;;  %v1729_v15 = vpack.c.bf16 %v116_v9, %v110_v7  ;;  %v373_v7 = vld [vmem:[#allocation5 + $0x9d8] sm:$0xff] }
  0xa6   :  { %v183_v9 = vld [vmem:[#allocation5 + $0x3e8] sm:$0xff] }
  0xa7   :  { %1566 = vmatpush1.bf16.msra.mxu1 %v1565_v32  ;;  %v56_v32 = vld [vmem:[#allocation2 + $0x20] sm:$0xff] }
  0xa8   :  { %1502 = vmatpush1.bf16.msra.mxu0 %v1501_v33  ;;  %1568 = vmatprep.subr.bf16.mxu1 %v1567_v34  ;;  %v1585_v33 = vpack.c.bf16 %v258_v23, %v252_v22  ;;  %v1713_v34 = vpack.c.bf16 %v68_v26, %v62_v24  ;;  %v122_v22 = vld [vmem:[#allocation5 + $0x200] sm:$0xff]  ;;  %v1731_v23 = vpack.c.bf16 %v129_v13, %v123_v12  ;;  %v128_v24 = vld [vmem:[#allocation5 + $0x230] sm:$0xff]  ;;  %v331_v26 = vld [vmem:[#allocation5 + $0x888] sm:$0xff] }
  0xa9   :  { %1504 = vmatprep.subr.bf16.mxu0 %v1503_v38  ;;  %v74_v38 = vld [vmem:[#allocation5 + $0x80] sm:$0xff]  ;;  %v1733_v31 = vpack.c.bf16 %v128_v24, %v122_v22  ;;  %v385_v22 = vld [vmem:[#allocation5 + $0xa38] sm:$0xff]  ;;  %v195_v24 = vld [vmem:[#allocation5 + $0x448] sm:$0xff] }
  0xab   :  { %1570 = vmatpush1.bf16.msra.mxu1 %v1569_v44  ;;  %v93_v44 = vld [vmem:[#allocation5 + $0x118] sm:$0xff] }
  0xac   :  { %1506 = vmatpush1.bf16.msra.mxu0 %v1505_v45  ;;  %1572 = vmatprep.subr.bf16.mxu1 %v1571_v46  ;;  %v1589_v45 = vpack.c.bf16 %v270_v37, %v264_v36  ;;  %v1717_v46 = vpack.c.bf16 %v80_v40, %v74_v38  ;;  %v1719_v51 = vpack.c.bf16 %v93_v44, %v87_v43  ;;  %v140_v37 = vld [vmem:[#allocation5 + $0x290] sm:$0xff]  ;;  %v337_v38 = vld [vmem:[#allocation5 + $0x8b8] sm:$0xff]  ;;  %v147_v40 = vld [vmem:[#allocation5 + $0x2c8] sm:$0xff] }
  0xad   :  { %1508 = vmatprep.subr.bf16.mxu0 %v1507_v50  ;;  %v86_v50 = vld [vmem:[#allocation5 + $0xe0] sm:$0xff]  ;;  %v1735_v36 = vpack.c.bf16 %v141_v28, %v135_v27 }
  0xaf   :  { %1574 = vmatpush1.bf16.msra.mxu1 %v1573_v56  ;;  %v1593_v56 = vpack.c.bf16 %v282_v49, %v276_v48  ;;  %v1739_v48 = vpack.c.bf16 %v153_v41, %v147_v40  ;;  %v152_v49 = vld [vmem:[#allocation5 + $0x2f0] sm:$0xff] }
  0xb0   :  { %1510 = vmatpush1.bf16.msra.mxu0 %v1509_v57  ;;  %1576 = vmatprep.subr.bf16.mxu1 %v1575_v58  ;;  %v1721_v57 = vpack.c.bf16 %v92_v52, %v86_v50  ;;  %v1595_v58 = vpack.c.bf16 %v295_v54, %v289_v53  ;;  %v349_v50 = vld [vmem:[#allocation5 + $0x918] sm:$0xff]  ;;  %v159_v52 = vld [vmem:[#allocation5 + $0x328] sm:$0xff] }
  0xb1   :  { %1512 = vmatprep.subr.bf16.mxu0 %v1511_v62  ;;  %v165_v53 = vld [vmem:[#allocation5 + $0x358] sm:$0xff] }
  0xb2   :  { %v1743_v59 = vpack.c.bf16 %v165_v53, %v159_v52 }
  0xb3   :  { %1578 = vmatpush1.bf16.msra.mxu1 %v1577_v4  ;;  %v1599_v4 = vpack.c.bf16 %v307_v1, %v301_v0  ;;  %v177_v0 = vld [vmem:[#allocation5 + $0x3b8] sm:$0xff] }
  0xb4   :  { %1514 = vmatpush1.bf16.msra.mxu0 %v1513_v5  ;;  %1580 = vmatprep.subr.bf16.mxu1 %v1579_v6  ;;  %v300_v5 = vld [vmem:[#allocation5 + $0x790] sm:$0xff]  ;;  %v306_v6 = vld [vmem:[#allocation5 + $0x7c0] sm:$0xff] }
  0xb5   :  { %1516 = vmatprep.subr.bf16.mxu0 %v1515_v10  ;;  %v313_v10 = vld [vmem:[#allocation5 + $0x7f8] sm:$0xff]  ;;  %v1601_v14 = vpack.c.bf16 %v306_v6, %v300_v5  ;;  %v176_v6 = vld [vmem:[#allocation5 + $0x3b0] sm:$0xff] }
  0xb7   :  { %1582 = vmatpush1.bf16.msra.mxu1 %v1581_v18  ;;  %v1603_v18 = vpack.c.bf16 %v319_v11, %v313_v10  ;;  %v189_v10 = vld [vmem:[#allocation5 + $0x418] sm:$0xff] }
  0xb8   :  { %1518 = vmatpush1.bf16.msra.mxu0 %v1517_v20  ;;  %1584 = vmatprep.subr.bf16.mxu1 %v1583_v21  ;;  %v312_v20 = vld [vmem:[#allocation5 + $0x7f0] sm:$0xff]  ;;  %v318_v21 = vld [vmem:[#allocation5 + $0x820] sm:$0xff] }
  0xb9   :  { %1712 = vmatprep.subr.bf16.mxu0 %v1711_v25  ;;  %v325_v25 = vld [vmem:[#allocation5 + $0x858] sm:$0xff]  ;;  %v1605_v30 = vpack.c.bf16 %v318_v21, %v312_v20  ;;  %v1751_v20 = vpack.c.bf16 %v189_v10, %v183_v9  ;;  %v188_v21 = vld [vmem:[#allocation5 + $0x410] sm:$0xff] }
  0xba   :  { %944 = vmatmul.mubr.f32.vlgmr.msra.gmra.mrb[2].mxu1 %v2094_v17  ;;  %v99_v17 = vld [vmem:[#allocation5 + $0x148] sm:$0xff] }
  0xbb   :  { %873 = vmatmul.mubr.f32.vlgmr.msra.gmra.mrb[0].mxu0 %v56_v32  ;;  %1586 = vmatpush1.bf16.msra.mxu1 %v1585_v33  ;;  %v1723_v62 = vpack.c.bf16 %v105_v55, %v99_v17  ;;  %v1607_v32 = vpack.c.bf16 %v331_v26, %v325_v25  ;;  %v324_v33 = vld [vmem:[#allocation5 + $0x850] sm:$0xff]  ;;  %v201_v25 = vld [vmem:[#allocation5 + $0x478] sm:$0xff] }
  0xbc   :  { %1714 = vmatpush1.bf16.msra.mxu0 %v1713_v34  ;;  %1588 = vmatprep.subr.bf16.mxu1 %v1587_v35  ;;  %v330_v34 = vld [vmem:[#allocation5 + $0x880] sm:$0xff] }
  0xbd   :  { %1716 = vmatprep.subr.bf16.mxu0 %v1715_v39  ;;  %1014 = vmatprep.mubr.f32.mxu1 %v2091_v19  ;;  %v117_v19 = vld [vmem:[#allocation5 + $0x1d8] sm:$0xff]  ;;  %v134_v35 = vld [vmem:[#allocation5 + $0x260] sm:$0xff]  ;;  %v343_v39 = vld [vmem:[#allocation5 + $0x8e8] sm:$0xff]  ;;  %v1609_v42 = vpack.c.bf16 %v330_v34, %v324_v33  ;;  %v1755_v33 = vpack.c.bf16 %v201_v25, %v195_v24 }
  0xbe   :  { %1156 = vmatprep.mubr.f32.mxu0 %v2088_v16  ;;  %v1725_v16 = vpack.c.bf16 %v104_v63, %v98_v61  ;;  %v1727_v8 = vpack.c.bf16 %v117_v19, %v111_v2  ;;  %v1737_v43 = vpack.c.bf16 %v140_v37, %v134_v35  ;;  %v1611_v44 = vpack.c.bf16 %v343_v39, %v337_v38  ;;  %v361_v61 = vld [vmem:[#allocation5 + $0x978] sm:$0xff]  ;;  %v171_v63 = vld [vmem:[#allocation5 + $0x388] sm:$0xff]  ;;  %v200_v34 = vld [vmem:[#allocation5 + $0x470] sm:$0xff] }
  0xbf   :  { %1590 = vmatpush1.bf16.msra.mxu1 %v1589_v45  ;;  %v336_v45 = vld [vmem:[#allocation5 + $0x8b0] sm:$0xff]  ;;  %v1747_v5 = vpack.c.bf16 %v177_v0, %v171_v63  ;;  %v397_v35 = vld [vmem:[#allocation5 + $0xa98] sm:$0xff]  ;;  %v207_v37 = vld [vmem:[#allocation5 + $0x4a8] sm:$0xff] }
  0xc0   :  { %1718 = vmatpush1.bf16.msra.mxu0 %v1717_v46  ;;  %1592 = vmatprep.subr.bf16.mxu1 %v1591_v47  ;;  %v342_v46 = vld [vmem:[#allocation5 + $0x8e0] sm:$0xff]  ;;  %v213_v38 = vld [vmem:[#allocation5 + $0x4d8] sm:$0xff] }
  0xc1   :  { %1720 = vmatprep.subr.bf16.mxu0 %v1719_v51  ;;  %v146_v47 = vld [vmem:[#allocation5 + $0x2c0] sm:$0xff]  ;;  %v355_v51 = vld [vmem:[#allocation5 + $0x948] sm:$0xff]  ;;  %v1613_v54 = vpack.c.bf16 %v342_v46, %v336_v45  ;;  %v1759_v45 = vpack.c.bf16 %v213_v38, %v207_v37  ;;  %v212_v46 = vld [vmem:[#allocation5 + $0x4d0] sm:$0xff] }
  0xc2   :  { %v1741_v17 = vpack.c.bf16 %v152_v49, %v146_v47  ;;  %v1615_v55 = vpack.c.bf16 %v355_v51, %v349_v50  ;;  %v409_v47 = vld [vmem:[#allocation5 + $0xaf8] sm:$0xff]  ;;  %v219_v49 = vld [vmem:[#allocation5 + $0x508] sm:$0xff] }
  0xc3   :  { %1594 = vmatpush1.bf16.msra.mxu1 %v1593_v56  ;;  %v348_v56 = vld [vmem:[#allocation5 + $0x910] sm:$0xff]  ;;  %v225_v50 = vld [vmem:[#allocation5 + $0x538] sm:$0xff] }
  0xc4   :  { %1722 = vmatpush1.bf16.msra.mxu0 %v1721_v57  ;;  %1596 = vmatprep.subr.bf16.mxu1 %v1595_v58  ;;  %v354_v57 = vld [vmem:[#allocation5 + $0x940] sm:$0xff] }
  0xc5   :  { %1724 = vmatprep.subr.bf16.mxu0 %v1723_v62  ;;  %v158_v58 = vld [vmem:[#allocation5 + $0x320] sm:$0xff]  ;;  %v367_v62 = vld [vmem:[#allocation5 + $0x9a8] sm:$0xff]  ;;  %v1617_v1 = vpack.c.bf16 %v354_v57, %v348_v56  ;;  %v1763_v56 = vpack.c.bf16 %v225_v50, %v219_v49  ;;  %v224_v57 = vld [vmem:[#allocation5 + $0x530] sm:$0xff] }
  0xc6   :  { %v1745_v2 = vpack.c.bf16 %v164_v60, %v158_v58  ;;  %v1619_v19 = vpack.c.bf16 %v367_v62, %v361_v61  ;;  %v421_v58 = vld [vmem:[#allocation5 + $0xb58] sm:$0xff]  ;;  %v231_v60 = vld [vmem:[#allocation5 + $0x568] sm:$0xff]  ;;  %v1928_v49 = vld [vmem:[#allocation2] sm:$0xff] }
  0xc7   :  { %1598 = vmatpush1.bf16.msra.mxu1 %v1597_v3  ;;  %v360_v3 = vld [vmem:[#allocation5 + $0x970] sm:$0xff]  ;;  %v237_v61 = vld [vmem:[#allocation5 + $0x598] sm:$0xff] }
  0xc8   :  { %1726 = vmatpush1.bf16.msra.mxu0 %v1725_v16  ;;  %1600 = vmatprep.subr.bf16.mxu1 %v1599_v4  ;;  %v366_v16 = vld [vmem:[#allocation5 + $0x9a0] sm:$0xff] }
  0xc9   :  { %1728 = vmatprep.subr.bf16.mxu0 %v1727_v8  ;;  %v170_v4 = vld [vmem:[#allocation5 + $0x380] sm:$0xff]  ;;  %v379_v8 = vld [vmem:[#allocation5 + $0xa08] sm:$0xff]  ;;  %v1621_v11 = vpack.c.bf16 %v366_v16, %v360_v3  ;;  %v1767_v3 = vpack.c.bf16 %v237_v61, %v231_v60  ;;  %v236_v16 = vld [vmem:[#allocation5 + $0x590] sm:$0xff] }
  0xca   :  { %v1749_v12 = vpack.c.bf16 %v176_v6, %v170_v4  ;;  %v1623_v13 = vpack.c.bf16 %v379_v8, %v373_v7  ;;  %v433_v4 = vld [vmem:[#allocation5 + $0xbb8] sm:$0xff]  ;;  %v243_v6 = vld [vmem:[#allocation5 + $0x5c8] sm:$0xff] }
  0xcb   :  { %1602 = vmatpush1.bf16.msra.mxu1 %v1601_v14  ;;  %v372_v14 = vld [vmem:[#allocation5 + $0x9d0] sm:$0xff]  ;;  %v249_v7 = vld [vmem:[#allocation5 + $0x5f8] sm:$0xff]  ;;  %v1929_v61 = vld [vmem:[#allocation2 + $0x18] sm:$0xff] }
  0xcc   :  { %1730 = vmatpush1.bf16.msra.mxu0 %v1729_v15  ;;  %1604 = vmatprep.subr.bf16.mxu1 %v1603_v18  ;;  %v378_v15 = vld [vmem:[#allocation5 + $0xa00] sm:$0xff]  ;;  %v297_v60 = vld [vmem:[#allocation5 + $0x778] sm:$0xff] }
  0xcd   :  { %1732 = vmatprep.subr.bf16.mxu0 %v1731_v23  ;;  %v182_v18 = vld [vmem:[#allocation5 + $0x3e0] sm:$0xff]  ;;  %v391_v23 = vld [vmem:[#allocation5 + $0xa68] sm:$0xff]  ;;  %v1625_v26 = vpack.c.bf16 %v378_v15, %v372_v14  ;;  %v1771_v14 = vpack.c.bf16 %v249_v7, %v243_v6  ;;  %v248_v15 = vld [vmem:[#allocation5 + $0x5f0] sm:$0xff] }
  0xce   :  { %v1753_v27 = vpack.c.bf16 %v188_v21, %v182_v18  ;;  %v1627_v28 = vpack.c.bf16 %v391_v23, %v385_v22  ;;  %v445_v18 = vld [vmem:[#allocation5 + $0xc18] sm:$0xff]  ;;  %v255_v21 = vld [vmem:[#allocation5 + $0x628] sm:$0xff] }
  0xcf   :  { %1606 = vmatpush1.bf16.msra.mxu1 %v1605_v30  ;;  %v384_v30 = vld [vmem:[#allocation5 + $0xa30] sm:$0xff]  ;;  %v261_v22 = vld [vmem:[#allocation5 + $0x658] sm:$0xff]  ;;  %v303_v6 = vld [vmem:[#allocation5 + $0x7a8] sm:$0xff] }
  0xd0   :  { %1734 = vmatpush1.bf16.msra.mxu0 %v1733_v31  ;;  %1608 = vmatprep.subr.bf16.mxu1 %v1607_v32  ;;  %v390_v31 = vld [vmem:[#allocation5 + $0xa60] sm:$0xff] }
  0xd1   :  { %1736 = vmatprep.subr.bf16.mxu0 %v1735_v36  ;;  %v194_v32 = vld [vmem:[#allocation5 + $0x440] sm:$0xff]  ;;  %v403_v36 = vld [vmem:[#allocation5 + $0xac8] sm:$0xff]  ;;  %v1629_v39 = vpack.c.bf16 %v390_v31, %v384_v30  ;;  %v1775_v30 = vpack.c.bf16 %v261_v22, %v255_v21  ;;  %v260_v31 = vld [vmem:[#allocation5 + $0x650] sm:$0xff] }
  0xd2   :  { %v1757_v40 = vpack.c.bf16 %v200_v34, %v194_v32  ;;  %v1631_v41 = vpack.c.bf16 %v403_v36, %v397_v35  ;;  %v457_v32 = vld [vmem:[#allocation5 + $0xc78] sm:$0xff]  ;;  %v267_v34 = vld [vmem:[#allocation5 + $0x688] sm:$0xff] }
  0xd3   :  { %1610 = vmatpush1.bf16.msra.mxu1 %v1609_v42  ;;  %v396_v42 = vld [vmem:[#allocation5 + $0xa90] sm:$0xff]  ;;  %v273_v35 = vld [vmem:[#allocation5 + $0x6b8] sm:$0xff] }
  0xd4   :  { %1738 = vmatpush1.bf16.msra.mxu0 %v1737_v43  ;;  %1612 = vmatprep.subr.bf16.mxu1 %v1611_v44  ;;  %v402_v43 = vld [vmem:[#allocation5 + $0xac0] sm:$0xff]  ;;  %v321_v21 = vld [vmem:[#allocation5 + $0x838] sm:$0xff] }
  0xd5   :  { %1740 = vmatprep.subr.bf16.mxu0 %v1739_v48  ;;  %v206_v44 = vld [vmem:[#allocation5 + $0x4a0] sm:$0xff]  ;;  %v415_v48 = vld [vmem:[#allocation5 + $0xb28] sm:$0xff]  ;;  %v1633_v51 = vpack.c.bf16 %v402_v43, %v396_v42  ;;  %v1779_v42 = vpack.c.bf16 %v273_v35, %v267_v34  ;;  %v272_v43 = vld [vmem:[#allocation5 + $0x6b0] sm:$0xff] }
  0xd6   :  { %v1761_v52 = vpack.c.bf16 %v212_v46, %v206_v44  ;;  %v1635_v53 = vpack.c.bf16 %v415_v48, %v409_v47  ;;  %v469_v44 = vld [vmem:[#allocation5 + $0xcd8] sm:$0xff]  ;;  %v2104_v46 = vld [vmem:[#allocation2 + $0x10] sm:$0xff]  ;;  %v279_v47 = vld [vmem:[#allocation5 + $0x6e8] sm:$0xff] }
  0xd7   :  { %1614 = vmatpush1.bf16.msra.mxu1 %v1613_v54  ;;  %v408_v54 = vld [vmem:[#allocation5 + $0xaf0] sm:$0xff]  ;;  %v285_v48 = vld [vmem:[#allocation5 + $0x718] sm:$0xff] }
  0xd8   :  { %1742 = vmatpush1.bf16.msra.mxu0 %v1741_v17  ;;  %1616 = vmatprep.subr.bf16.mxu1 %v1615_v55  ;;  %v414_v17 = vld [vmem:[#allocation5 + $0xb20] sm:$0xff]  ;;  %v333_v34 = vld [vmem:[#allocation5 + $0x898] sm:$0xff] }
  0xd9   :  { %1744 = vmatprep.subr.bf16.mxu0 %v1743_v59  ;;  %v218_v55 = vld [vmem:[#allocation5 + $0x500] sm:$0xff]  ;;  %v427_v59 = vld [vmem:[#allocation5 + $0xb88] sm:$0xff]  ;;  %v1637_v62 = vpack.c.bf16 %v414_v17, %v408_v54 }
  0xda   :  { %v1765_v63 = vpack.c.bf16 %v224_v57, %v218_v55  ;;  %v1639_v0 = vpack.c.bf16 %v427_v59, %v421_v58  ;;  %v474_v54 = vld [vmem:[#allocation5 + $0xd00] sm:$0xff]  ;;  %v1783_v55 = vpack.c.bf16 %v285_v48, %v279_v47  ;;  %v481_v57 = vld [vmem:[#allocation5 + $0xd38] sm:$0xff]  ;;  %v487_v58 = vld [vmem:[#allocation5 + $0xd68] sm:$0xff] }
  0xdb   :  { %1618 = vmatpush1.bf16.msra.mxu1 %v1617_v1  ;;  %v420_v1 = vld [vmem:[#allocation5 + $0xb50] sm:$0xff]  ;;  %v278_v17 = vld [vmem:[#allocation5 + $0x6e0] sm:$0xff]  ;;  %v291_v59 = vld [vmem:[#allocation5 + $0x748] sm:$0xff] }
  0xdc   :  { %1746 = vmatpush1.bf16.msra.mxu0 %v1745_v2  ;;  %1620 = vmatprep.subr.bf16.mxu1 %v1619_v19  ;;  %v426_v2 = vld [vmem:[#allocation5 + $0xb80] sm:$0xff]  ;;  %v345_v47 = vld [vmem:[#allocation5 + $0x8f8] sm:$0xff] }
  0xdd   :  { %1748 = vmatprep.subr.bf16.mxu0 %v1747_v5  ;;  %v230_v19 = vld [vmem:[#allocation5 + $0x560] sm:$0xff]  ;;  %v439_v5 = vld [vmem:[#allocation5 + $0xbe8] sm:$0xff]  ;;  %v1641_v8 = vpack.c.bf16 %v426_v2, %v420_v1  ;;  %v480_v1 = vld [vmem:[#allocation5 + $0xd30] sm:$0xff] }
  0xde   :  { %v1769_v9 = vpack.c.bf16 %v236_v16, %v230_v19  ;;  %v1643_v10 = vpack.c.bf16 %v439_v5, %v433_v4  ;;  %v486_v2 = vld [vmem:[#allocation5 + $0xd60] sm:$0xff]  ;;  %v296_v16 = vld [vmem:[#allocation5 + $0x770] sm:$0xff]  ;;  %v493_v4 = vld [vmem:[#allocation5 + $0xd98] sm:$0xff] }
  0xdf   :  { %1622 = vmatpush1.bf16.msra.mxu1 %v1621_v11  ;;  %v432_v11 = vld [vmem:[#allocation5 + $0xbb0] sm:$0xff]  ;;  %v290_v19 = vld [vmem:[#allocation5 + $0x740] sm:$0xff]  ;;  %v499_v5 = vld [vmem:[#allocation5 + $0xdc8] sm:$0xff]  ;;  %v1661_v7 = vpack.c.bf16 %v486_v2, %v480_v1 }
  0xe0   :  { %1750 = vmatpush1.bf16.msra.mxu0 %v1749_v12  ;;  %1624 = vmatprep.subr.bf16.mxu1 %v1623_v13  ;;  %v438_v12 = vld [vmem:[#allocation5 + $0xbe0] sm:$0xff]  ;;  %v356_v2 = vld [vmem:[#allocation5 + $0x950] sm:$0xff] }
  0xe1   :  { %1752 = vmatprep.subr.bf16.mxu0 %v1751_v20  ;;  %v242_v13 = vld [vmem:[#allocation5 + $0x5c0] sm:$0xff]  ;;  %v451_v20 = vld [vmem:[#allocation5 + $0xc48] sm:$0xff]  ;;  %v1645_v23 = vpack.c.bf16 %v438_v12, %v432_v11 }
  0xe2   :  { %v1773_v24 = vpack.c.bf16 %v248_v15, %v242_v13  ;;  %v1647_v25 = vpack.c.bf16 %v451_v20, %v445_v18  ;;  %v498_v11 = vld [vmem:[#allocation5 + $0xdc0] sm:$0xff]  ;;  %v505_v15 = vld [vmem:[#allocation5 + $0xdf8] sm:$0xff]  ;;  %v511_v18 = vld [vmem:[#allocation5 + $0xe28] sm:$0xff] }
  0xe3   :  { %1626 = vmatpush1.bf16.msra.mxu1 %v1625_v26  ;;  %v444_v26 = vld [vmem:[#allocation5 + $0xc10] sm:$0xff]  ;;  %v302_v12 = vld [vmem:[#allocation5 + $0x7a0] sm:$0xff]  ;;  %v315_v20 = vld [vmem:[#allocation5 + $0x808] sm:$0xff] }
  0xe4   :  { %1754 = vmatpush1.bf16.msra.mxu0 %v1753_v27  ;;  %1628 = vmatprep.subr.bf16.mxu1 %v1627_v28  ;;  %v450_v27 = vld [vmem:[#allocation5 + $0xc40] sm:$0xff] }
  0xe5   :  { %1756 = vmatprep.subr.bf16.mxu0 %v1755_v33  ;;  %v254_v28 = vld [vmem:[#allocation5 + $0x620] sm:$0xff]  ;;  %v463_v33 = vld [vmem:[#allocation5 + $0xca8] sm:$0xff]  ;;  %v1649_v36 = vpack.c.bf16 %v450_v27, %v444_v26 }
  0xe6   :  { %v1777_v37 = vpack.c.bf16 %v260_v31, %v254_v28  ;;  %v1651_v38 = vpack.c.bf16 %v463_v33, %v457_v32  ;;  %v510_v26 = vld [vmem:[#allocation5 + $0xe20] sm:$0xff]  ;;  %v1795_v28 = vpack.c.bf16 %v321_v21, %v315_v20  ;;  %v517_v31 = vld [vmem:[#allocation5 + $0xe58] sm:$0xff]  ;;  %v523_v32 = vld [vmem:[#allocation5 + $0xe88] sm:$0xff] }
  0xe7   :  { %1630 = vmatpush1.bf16.msra.mxu1 %v1629_v39  ;;  %v456_v39 = vld [vmem:[#allocation5 + $0xc70] sm:$0xff]  ;;  %v314_v27 = vld [vmem:[#allocation5 + $0x800] sm:$0xff]  ;;  %v327_v33 = vld [vmem:[#allocation5 + $0x868] sm:$0xff] }
  0xe8   :  { %1758 = vmatpush1.bf16.msra.mxu0 %v1757_v40  ;;  %1632 = vmatprep.subr.bf16.mxu1 %v1631_v41  ;;  %v462_v40 = vld [vmem:[#allocation5 + $0xca0] sm:$0xff] }
  0xe9   :  { %1760 = vmatprep.subr.bf16.mxu0 %v1759_v45  ;;  %v266_v41 = vld [vmem:[#allocation5 + $0x680] sm:$0xff]  ;;  %v475_v45 = vld [vmem:[#allocation5 + $0xd08] sm:$0xff]  ;;  %v1653_v50 = vpack.c.bf16 %v462_v40, %v456_v39 }
  0xea   :  { %v522_v39 = vld [vmem:[#allocation5 + $0xe80] sm:$0xff] }
  0xeb   :  { %1634 = vmatpush1.bf16.msra.mxu1 %v1633_v51  ;;  %v1781_v51 = vpack.c.bf16 %v272_v43, %v266_v41  ;;  %v326_v40 = vld [vmem:[#allocation5 + $0x860] sm:$0xff]  ;;  %v1799_v41 = vpack.c.bf16 %v333_v34, %v327_v33  ;;  %v529_v43 = vld [vmem:[#allocation5 + $0xeb8] sm:$0xff] }
  0xec   :  { %1762 = vmatpush1.bf16.msra.mxu0 %v1761_v52  ;;  %1636 = vmatprep.subr.bf16.mxu1 %v1635_v53  ;;  %v1655_v52 = vpack.c.bf16 %v475_v45, %v469_v44  ;;  %v468_v53 = vld [vmem:[#allocation5 + $0xcd0] sm:$0xff]  ;;  %v535_v44 = vld [vmem:[#allocation5 + $0xee8] sm:$0xff] }
  0xed   :  { %1764 = vmatprep.subr.bf16.mxu0 %v1763_v56  ;;  %v284_v56 = vld [vmem:[#allocation5 + $0x710] sm:$0xff]  ;;  %v339_v45 = vld [vmem:[#allocation5 + $0x8c8] sm:$0xff] }
  0xef   :  { %1638 = vmatpush1.bf16.msra.mxu1 %v1637_v62  ;;  %v1657_v62 = vpack.c.bf16 %v474_v54, %v468_v53  ;;  %v338_v53 = vld [vmem:[#allocation5 + $0x8c0] sm:$0xff]  ;;  %v1803_v54 = vpack.c.bf16 %v345_v47, %v339_v45 }
  0xf0   :  { %1766 = vmatpush1.bf16.msra.mxu0 %v1765_v63  ;;  %1640 = vmatprep.subr.bf16.mxu1 %v1639_v0  ;;  %v1785_v63 = vpack.c.bf16 %v284_v56, %v278_v17  ;;  %v1659_v0 = vpack.c.bf16 %v487_v58, %v481_v57  ;;  %v344_v17 = vld [vmem:[#allocation5 + $0x8f0] sm:$0xff]  ;;  %v547_v56 = vld [vmem:[#allocation5 + $0xf48] sm:$0xff]  ;;  %v357_v58 = vld [vmem:[#allocation5 + $0x958] sm:$0xff] }
  0xf1   :  { %1768 = vmatprep.subr.bf16.mxu0 %v1767_v3  ;;  %v1787_v3 = vpack.c.bf16 %v297_v60, %v291_v59  ;;  %v351_v57 = vld [vmem:[#allocation5 + $0x928] sm:$0xff]  ;;  %v1805_v60 = vpack.c.bf16 %v344_v17, %v338_v53  ;;  %v601_v53 = vld [vmem:[#allocation5 + $0x10f8] sm:$0xff] }
  0xf2   :  { %v1807_v1 = vpack.c.bf16 %v357_v58, %v351_v57  ;;  %v411_v17 = vld [vmem:[#allocation5 + $0xb08] sm:$0xff] }
  0xf3   :  { %1642 = vmatpush1.bf16.msra.mxu1 %v1641_v8  ;;  %v1789_v8 = vpack.c.bf16 %v296_v16, %v290_v19  ;;  %v553_v19 = vld [vmem:[#allocation5 + $0xf78] sm:$0xff]  ;;  %v363_v16 = vld [vmem:[#allocation5 + $0x988] sm:$0xff] }
  0xf4   :  { %1770 = vmatpush1.bf16.msra.mxu0 %v1769_v9  ;;  %1644 = vmatprep.subr.bf16.mxu1 %v1643_v10  ;;  %v1663_v9 = vpack.c.bf16 %v499_v5, %v493_v4  ;;  %v492_v10 = vld [vmem:[#allocation5 + $0xd90] sm:$0xff]  ;;  %v369_v4 = vld [vmem:[#allocation5 + $0x9b8] sm:$0xff] }
  0xf5   :  { %1772 = vmatprep.subr.bf16.mxu0 %v1771_v14  ;;  %v308_v14 = vld [vmem:[#allocation5 + $0x7d0] sm:$0xff]  ;;  %v1665_v22 = vpack.c.bf16 %v498_v11, %v492_v10  ;;  %v1811_v10 = vpack.c.bf16 %v369_v4, %v363_v16 }
  0xf6   :  { %v368_v11 = vld [vmem:[#allocation5 + $0x9b0] sm:$0xff] }
  0xf7   :  { %1646 = vmatpush1.bf16.msra.mxu1 %v1645_v23  ;;  %v1793_v23 = vpack.c.bf16 %v308_v14, %v302_v12  ;;  %v565_v12 = vld [vmem:[#allocation5 + $0xfd8] sm:$0xff]  ;;  %v375_v14 = vld [vmem:[#allocation5 + $0x9e8] sm:$0xff] }
  0xf8   :  { %1774 = vmatpush1.bf16.msra.mxu0 %v1773_v24  ;;  %1648 = vmatprep.subr.bf16.mxu1 %v1647_v25  ;;  %v1667_v24 = vpack.c.bf16 %v511_v18, %v505_v15  ;;  %v504_v25 = vld [vmem:[#allocation5 + $0xdf0] sm:$0xff]  ;;  %v381_v15 = vld [vmem:[#allocation5 + $0xa18] sm:$0xff] }
  0xf9   :  { %1776 = vmatprep.subr.bf16.mxu0 %v1775_v30  ;;  %v320_v30 = vld [vmem:[#allocation5 + $0x830] sm:$0xff]  ;;  %v1669_v35 = vpack.c.bf16 %v510_v26, %v504_v25  ;;  %v1815_v25 = vpack.c.bf16 %v381_v15, %v375_v14 }
  0xfa   :  { %1015 = vmatmul.mubr.f32.vlgmr.msra.gmra.mrb[2].mxu1 %v2104_v46  ;;  %v380_v26 = vld [vmem:[#allocation5 + $0xa10] sm:$0xff] }
  0xfb   :  { %1650 = vmatpush1.bf16.msra.mxu1 %v1649_v36  ;;  %1157 = vmatmul.mubr.f32.vlgmr.msra.gmra.mrb[2].mxu0 %v1928_v49  ;;  %v1797_v36 = vpack.c.bf16 %v320_v30, %v314_v27  ;;  %v577_v27 = vld [vmem:[#allocation5 + $0x1038] sm:$0xff]  ;;  %v387_v30 = vld [vmem:[#allocation5 + $0xa48] sm:$0xff] }
  0xfc   :  { %1778 = vmatpush1.bf16.msra.mxu0 %v1777_v37  ;;  %1652 = vmatprep.subr.bf16.mxu1 %v1651_v38  ;;  %v1671_v37 = vpack.c.bf16 %v523_v32, %v517_v31  ;;  %v516_v38 = vld [vmem:[#allocation5 + $0xe50] sm:$0xff]  ;;  %v393_v31 = vld [vmem:[#allocation5 + $0xa78] sm:$0xff] }
  0xfd   :  { %1780 = vmatprep.subr.bf16.mxu0 %v1779_v42  ;;  %1085 = vmatprep.mubr.f32.mxu1 %v2098_v29  ;;  %v309_v29 = vld [vmem:[#allocation5 + $0x7d8] sm:$0xff]  ;;  %v332_v42 = vld [vmem:[#allocation5 + $0x890] sm:$0xff]  ;;  %v1673_v48 = vpack.c.bf16 %v522_v39, %v516_v38  ;;  %v1819_v38 = vpack.c.bf16 %v393_v31, %v387_v30  ;;  %v446_v30 = vld [vmem:[#allocation5 + $0xc20] sm:$0xff] }
  0xfe   :  { %1227 = vmatprep.mubr.f32.mxu0 %v1929_v61  ;;  %v1791_v13 = vpack.c.bf16 %v309_v29, %v303_v6  ;;  %v1801_v49 = vpack.c.bf16 %v332_v42, %v326_v40  ;;  %v392_v39 = vld [vmem:[#allocation5 + $0xa70] sm:$0xff]  ;;  %v589_v40 = vld [vmem:[#allocation5 + $0x1098] sm:$0xff]  ;;  %v399_v42 = vld [vmem:[#allocation5 + $0xaa8] sm:$0xff] }
  0xff   :  { %1654 = vmatpush1.bf16.msra.mxu1 %v1653_v50  ;;  %v1675_v50 = vpack.c.bf16 %v535_v44, %v529_v43  ;;  %v405_v43 = vld [vmem:[#allocation5 + $0xad8] sm:$0xff]  ;;  %v452_v31 = vld [vmem:[#allocation5 + $0xc50] sm:$0xff] }
 0x100   :  { %1782 = vmatpush1.bf16.msra.mxu0 %v1781_v51  ;;  %1656 = vmatprep.subr.bf16.mxu1 %v1655_v52  ;;  %v528_v51 = vld [vmem:[#allocation5 + $0xeb0] sm:$0xff]  ;;  %v534_v52 = vld [vmem:[#allocation5 + $0xee0] sm:$0xff] }
 0x101   :  { %1784 = vmatprep.subr.bf16.mxu0 %v1783_v55  ;;  %v541_v55 = vld [vmem:[#allocation5 + $0xf18] sm:$0xff]  ;;  %v1677_v59 = vpack.c.bf16 %v534_v52, %v528_v51  ;;  %v1823_v51 = vpack.c.bf16 %v405_v43, %v399_v42  ;;  %v404_v52 = vld [vmem:[#allocation5 + $0xad0] sm:$0xff] }
 0x102   :  { %v1679_v61 = vpack.c.bf16 %v547_v56, %v541_v55  ;;  %v417_v55 = vld [vmem:[#allocation5 + $0xb38] sm:$0xff] }
 0x103   :  { %1658 = vmatpush1.bf16.msra.mxu1 %v1657_v62  ;;  %v540_v62 = vld [vmem:[#allocation5 + $0xf10] sm:$0xff]  ;;  %v1931_v42 = vld [vmem:[#allocation2 + $0x28] sm:$0xff] }
 0x104   :  { %1786 = vmatpush1.bf16.msra.mxu0 %v1785_v63  ;;  %1660 = vmatprep.subr.bf16.mxu1 %v1659_v0  ;;  %v546_v63 = vld [vmem:[#allocation5 + $0xf40] sm:$0xff] }
 0x105   :  { %1788 = vmatprep.subr.bf16.mxu0 %v1787_v3  ;;  %v350_v0 = vld [vmem:[#allocation5 + $0x920] sm:$0xff]  ;;  %v559_v3 = vld [vmem:[#allocation5 + $0xfa8] sm:$0xff]  ;;  %v1681_v5 = vpack.c.bf16 %v546_v63, %v540_v62  ;;  %v1827_v62 = vpack.c.bf16 %v417_v55, %v411_v17  ;;  %v416_v63 = vld [vmem:[#allocation5 + $0xb30] sm:$0xff] }
 0x106   :  { %v1809_v6 = vpack.c.bf16 %v356_v2, %v350_v0  ;;  %v1683_v29 = vpack.c.bf16 %v559_v3, %v553_v19  ;;  %v613_v0 = vld [vmem:[#allocation5 + $0x1158] sm:$0xff]  ;;  %v423_v2 = vld [vmem:[#allocation5 + $0xb68] sm:$0xff]  ;;  %v494_v55 = vld [vmem:[#allocation5 + $0xda0] sm:$0xff] }
 0x107   :  { %1662 = vmatpush1.bf16.msra.mxu1 %v1661_v7  ;;  %v552_v7 = vld [vmem:[#allocation5 + $0xf70] sm:$0xff]  ;;  %v429_v19 = vld [vmem:[#allocation5 + $0xb98] sm:$0xff] }
 0x108   :  { %1790 = vmatpush1.bf16.msra.mxu0 %v1789_v8  ;;  %1664 = vmatprep.subr.bf16.mxu1 %v1663_v9  ;;  %v558_v8 = vld [vmem:[#allocation5 + $0xfa0] sm:$0xff] }
 0x109   :  { %1792 = vmatprep.subr.bf16.mxu0 %v1791_v13  ;;  %v362_v9 = vld [vmem:[#allocation5 + $0x980] sm:$0xff]  ;;  %v571_v13 = vld [vmem:[#allocation5 + $0x1008] sm:$0xff]  ;;  %v1685_v18 = vpack.c.bf16 %v558_v8, %v552_v7  ;;  %v1831_v7 = vpack.c.bf16 %v429_v19, %v423_v2  ;;  %v428_v8 = vld [vmem:[#allocation5 + $0xb90] sm:$0xff] }
 0x10a   :  { %v1813_v20 = vpack.c.bf16 %v368_v11, %v362_v9  ;;  %v1687_v21 = vpack.c.bf16 %v571_v13, %v565_v12  ;;  %v625_v9 = vld [vmem:[#allocation5 + $0x11b8] sm:$0xff]  ;;  %v435_v11 = vld [vmem:[#allocation5 + $0xbc8] sm:$0xff]  ;;  %v518_v19 = vld [vmem:[#allocation5 + $0xe60] sm:$0xff] }
 0x10b   :  { %1666 = vmatpush1.bf16.msra.mxu1 %v1665_v22  ;;  %v564_v22 = vld [vmem:[#allocation5 + $0xfd0] sm:$0xff]  ;;  %v441_v12 = vld [vmem:[#allocation5 + $0xbf8] sm:$0xff] }
 0x10c   :  { %1794 = vmatpush1.bf16.msra.mxu0 %v1793_v23  ;;  %1668 = vmatprep.subr.bf16.mxu1 %v1667_v24  ;;  %v570_v23 = vld [vmem:[#allocation5 + $0x1000] sm:$0xff] }
 0x10d   :  { %1796 = vmatprep.subr.bf16.mxu0 %v1795_v28  ;;  %v374_v24 = vld [vmem:[#allocation5 + $0x9e0] sm:$0xff]  ;;  %v583_v28 = vld [vmem:[#allocation5 + $0x1068] sm:$0xff]  ;;  %v1689_v32 = vpack.c.bf16 %v570_v23, %v564_v22  ;;  %v440_v23 = vld [vmem:[#allocation5 + $0xbf0] sm:$0xff] }
 0x10e   :  { %v1817_v33 = vpack.c.bf16 %v380_v26, %v374_v24  ;;  %v1691_v34 = vpack.c.bf16 %v583_v28, %v577_v27  ;;  %v434_v22 = vld [vmem:[#allocation5 + $0xbc0] sm:$0xff]  ;;  %v447_v24 = vld [vmem:[#allocation5 + $0xc28] sm:$0xff] }
 0x10f   :  { %1670 = vmatpush1.bf16.msra.mxu1 %v1669_v35  ;;  %v576_v35 = vld [vmem:[#allocation5 + $0x1030] sm:$0xff]  ;;  %v1837_v27 = vpack.c.bf16 %v440_v23, %v434_v22  ;;  %v554_v23 = vld [vmem:[#allocation5 + $0xf80] sm:$0xff] }
 0x110   :  { %1798 = vmatpush1.bf16.msra.mxu0 %v1797_v36  ;;  %1672 = vmatprep.subr.bf16.mxu1 %v1671_v37  ;;  %v582_v36 = vld [vmem:[#allocation5 + $0x1060] sm:$0xff] }
 0x111   :  { %1800 = vmatprep.subr.bf16.mxu0 %v1799_v41  ;;  %v386_v37 = vld [vmem:[#allocation5 + $0xa40] sm:$0xff]  ;;  %v595_v41 = vld [vmem:[#allocation5 + $0x10c8] sm:$0xff]  ;;  %v1693_v44 = vpack.c.bf16 %v582_v36, %v576_v35 }
 0x112   :  { %v1821_v45 = vpack.c.bf16 %v392_v39, %v386_v37  ;;  %v1695_v47 = vpack.c.bf16 %v595_v41, %v589_v40  ;;  %v458_v36 = vld [vmem:[#allocation5 + $0xc80] sm:$0xff]  ;;  %v464_v37 = vld [vmem:[#allocation5 + $0xcb0] sm:$0xff]  ;;  %v471_v39 = vld [vmem:[#allocation5 + $0xce8] sm:$0xff] }
 0x113   :  { %1674 = vmatpush1.bf16.msra.mxu1 %v1673_v48  ;;  %v588_v48 = vld [vmem:[#allocation5 + $0x1090] sm:$0xff]  ;;  %v477_v40 = vld [vmem:[#allocation5 + $0xd18] sm:$0xff]  ;;  %v1845_v41 = vpack.c.bf16 %v464_v37, %v458_v36  ;;  %v578_v36 = vld [vmem:[#allocation5 + $0x1040] sm:$0xff] }
 0x114   :  { %1802 = vmatpush1.bf16.msra.mxu0 %v1801_v49  ;;  %1676 = vmatprep.subr.bf16.mxu1 %v1675_v50  ;;  %v594_v49 = vld [vmem:[#allocation5 + $0x10c0] sm:$0xff]  ;;  %v1847_v43 = vpack.c.bf16 %v477_v40, %v471_v39  ;;  %v584_v37 = vld [vmem:[#allocation5 + $0x1070] sm:$0xff]  ;;  %v591_v39 = vld [vmem:[#allocation5 + $0x10a8] sm:$0xff] }
 0x115   :  { %1804 = vmatprep.subr.bf16.mxu0 %v1803_v54  ;;  %v398_v50 = vld [vmem:[#allocation5 + $0xaa0] sm:$0xff]  ;;  %v607_v54 = vld [vmem:[#allocation5 + $0x1128] sm:$0xff]  ;;  %v1697_v56 = vpack.c.bf16 %v594_v49, %v588_v48  ;;  %v489_v48 = vld [vmem:[#allocation5 + $0xd78] sm:$0xff] }
 0x116   :  { %v1825_v57 = vpack.c.bf16 %v404_v52, %v398_v50  ;;  %v1699_v58 = vpack.c.bf16 %v607_v54, %v601_v53  ;;  %v488_v52 = vld [vmem:[#allocation5 + $0xd70] sm:$0xff]  ;;  %v495_v53 = vld [vmem:[#allocation5 + $0xda8] sm:$0xff]  ;;  %v501_v54 = vld [vmem:[#allocation5 + $0xdd8] sm:$0xff] }
 0x117   :  { %1678 = vmatpush1.bf16.msra.mxu1 %v1677_v59  ;;  %v600_v59 = vld [vmem:[#allocation5 + $0x10f0] sm:$0xff]  ;;  %v1855_v17 = vpack.c.bf16 %v501_v54, %v495_v53  ;;  %v597_v40 = vld [vmem:[#allocation5 + $0x10d8] sm:$0xff] }
 0x118   :  { %1806 = vmatpush1.bf16.msra.mxu0 %v1805_v60  ;;  %1680 = vmatprep.subr.bf16.mxu1 %v1679_v61  ;;  %v606_v60 = vld [vmem:[#allocation5 + $0x1120] sm:$0xff]  ;;  %v621_v53 = vld [vmem:[#allocation5 + $0x1198] sm:$0xff] }
 0x119   :  { %1808 = vmatprep.subr.bf16.mxu0 %v1807_v1  ;;  %v410_v61 = vld [vmem:[#allocation5 + $0xb00] sm:$0xff]  ;;  %v619_v1 = vld [vmem:[#allocation5 + $0x1188] sm:$0xff]  ;;  %v1701_v3 = vpack.c.bf16 %v606_v60, %v600_v59 }
 0x11a   :  { %v1829_v16 = vpack.c.bf16 %v416_v63, %v410_v61  ;;  %v1703_v4 = vpack.c.bf16 %v619_v1, %v613_v0  ;;  %v506_v61 = vld [vmem:[#allocation5 + $0xe00] sm:$0xff]  ;;  %v519_v63 = vld [vmem:[#allocation5 + $0xe68] sm:$0xff]  ;;  %v525_v0 = vld [vmem:[#allocation5 + $0xe98] sm:$0xff] }
 0x11b   :  { %1682 = vmatpush1.bf16.msra.mxu1 %v1681_v5  ;;  %v612_v5 = vld [vmem:[#allocation5 + $0x1150] sm:$0xff]  ;;  %v1863_v2 = vpack.c.bf16 %v525_v0, %v519_v63  ;;  %v636_v63 = vlaneseq }
 0x11c   :  { %1810 = vmatpush1.bf16.msra.mxu0 %v1809_v6  ;;  %1684 = vmatprep.subr.bf16.mxu1 %v1683_v29  ;;  %v618_v6 = vld [vmem:[#allocation5 + $0x1180] sm:$0xff] }
 0x11d   :  { %1812 = vmatprep.subr.bf16.mxu0 %v1811_v10  ;;  %v422_v29 = vld [vmem:[#allocation5 + $0xb60] sm:$0xff]  ;;  %v631_v10 = vld [vmem:[#allocation5 + $0x11e8] sm:$0xff]  ;;  %v1705_v13 = vpack.c.bf16 %v618_v6, %v612_v5  ;;  %v537_v5 = vld [vmem:[#allocation5 + $0xef8] sm:$0xff]  ;;  %v637_v0 = vshrl.u32 %v636_v63, 7 }
 0x11e   :  { %v1833_v14 = vpack.c.bf16 %v428_v8, %v422_v29  ;;  %v1707_v15 = vpack.c.bf16 %v631_v10, %v625_v9  ;;  %v530_v8 = vld [vmem:[#allocation5 + $0xec0] sm:$0xff]  ;;  %v536_v9 = vld [vmem:[#allocation5 + $0xef0] sm:$0xff]  ;;  %v543_v10 = vld [vmem:[#allocation5 + $0xf28] sm:$0xff] }
 0x11f   :  { %1686 = vmatpush1.bf16.msra.mxu1 %v1685_v18  ;;  %v624_v18 = vld [vmem:[#allocation5 + $0x11b0] sm:$0xff] }
 0x120   :  { %1814 = vmatpush1.bf16.msra.mxu0 %v1813_v20  ;;  %1688 = vmatprep.subr.bf16.mxu1 %v1687_v21  ;;  %v630_v20 = vld [vmem:[#allocation5 + $0x11e0] sm:$0xff]  ;;  %v1835_v21 = vpack.c.bf16 %v441_v12, %v435_v11  ;;  %v549_v11 = vld [vmem:[#allocation5 + $0xf58] sm:$0xff]  ;;  %v1869_v12 = vpack.c.bf16 %v536_v9, %v530_v8 }
 0x121   :  { %1816 = vmatprep.subr.bf16.mxu0 %v1815_v25  ;;  %v453_v25 = vld [vmem:[#allocation5 + $0xc58] sm:$0xff]  ;;  %v1709_v26 = vpack.c.bf16 %v630_v20, %v624_v18  ;;  %v555_v18 = vld [vmem:[#allocation5 + $0xf88] sm:$0xff] }
 0x122   :  { %v1839_v28 = vpack.c.bf16 %v453_v25, %v447_v24  ;;  %v561_v20 = vld [vmem:[#allocation5 + $0xfb8] sm:$0xff]  ;;  %v560_v24 = vld [vmem:[#allocation5 + $0xfb0] sm:$0xff]  ;;  %v567_v25 = vld [vmem:[#allocation5 + $0xfe8] sm:$0xff] }
 0x123   :  { %1690 = vmatpush1.bf16.msra.mxu1 %v1689_v32  ;;  %v459_v32 = vld [vmem:[#allocation5 + $0xc88] sm:$0xff]  ;;  %v1875_v22 = vpack.c.bf16 %v561_v20, %v555_v18 }
 0x124   :  { %1818 = vmatpush1.bf16.msra.mxu0 %v1817_v33  ;;  %1692 = vmatprep.subr.bf16.mxu1 %v1691_v34  ;;  %v465_v33 = vld [vmem:[#allocation5 + $0xcb8] sm:$0xff]  ;;  %v1841_v34 = vpack.c.bf16 %v452_v31, %v446_v30  ;;  %v566_v30 = vld [vmem:[#allocation5 + $0xfe0] sm:$0xff]  ;;  %v572_v31 = vld [vmem:[#allocation5 + $0x1010] sm:$0xff] }
 0x125   :  { %1820 = vmatprep.subr.bf16.mxu0 %v1819_v38  ;;  %v1843_v35 = vpack.c.bf16 %v465_v33, %v459_v32  ;;  %v2108_v38 = vld [vmem:[#allocation2 + $0x20] sm:$0xff]  ;;  %v579_v32 = vld [vmem:[#allocation5 + $0x1048] sm:$0xff]  ;;  %v585_v33 = vld [vmem:[#allocation5 + $0x1078] sm:$0xff] }
 0x127   :  { %1694 = vmatpush1.bf16.msra.mxu1 %v1693_v44  ;;  %v470_v44 = vld [vmem:[#allocation5 + $0xce0] sm:$0xff] }
 0x128   :  { %1822 = vmatpush1.bf16.msra.mxu0 %v1821_v45  ;;  %1696 = vmatprep.subr.bf16.mxu1 %v1695_v47  ;;  %v476_v45 = vld [vmem:[#allocation5 + $0xd10] sm:$0xff]  ;;  %v483_v47 = vld [vmem:[#allocation5 + $0xd48] sm:$0xff] }
 0x129   :  { %1824 = vmatprep.subr.bf16.mxu0 %v1823_v51  ;;  %v1849_v49 = vpack.c.bf16 %v476_v45, %v470_v44  ;;  %v1851_v50 = vpack.c.bf16 %v489_v48, %v483_v47  ;;  %v482_v51 = vld [vmem:[#allocation5 + $0xd40] sm:$0xff]  ;;  %v596_v44 = vld [vmem:[#allocation5 + $0x10d0] sm:$0xff]  ;;  %v603_v45 = vld [vmem:[#allocation5 + $0x1108] sm:$0xff] }
 0x12a   :  { %v609_v47 = vld [vmem:[#allocation5 + $0x1138] sm:$0xff] }
 0x12b   :  { %1698 = vmatpush1.bf16.msra.mxu1 %v1697_v56  ;;  %v500_v56 = vld [vmem:[#allocation5 + $0xdd0] sm:$0xff] }
 0x12c   :  { %1826 = vmatpush1.bf16.msra.mxu0 %v1825_v57  ;;  %1700 = vmatprep.subr.bf16.mxu1 %v1699_v58  ;;  %v507_v57 = vld [vmem:[#allocation5 + $0xe08] sm:$0xff]  ;;  %v513_v58 = vld [vmem:[#allocation5 + $0xe38] sm:$0xff]  ;;  %v1857_v59 = vpack.c.bf16 %v500_v56, %v494_v55  ;;  %v620_v55 = vld [vmem:[#allocation5 + $0x1190] sm:$0xff] }
 0x12d   :  { %1828 = vmatprep.subr.bf16.mxu0 %v1827_v62  ;;  %v1859_v60 = vpack.c.bf16 %v513_v58, %v507_v57  ;;  %v512_v62 = vld [vmem:[#allocation5 + $0xe30] sm:$0xff]  ;;  %v627_v56 = vld [vmem:[#allocation5 + $0x11c8] sm:$0xff]  ;;  %v633_v57 = vld [vmem:[#allocation5 + $0x11f8] sm:$0xff] }
 0x12e   :  { %v1861_v1 = vpack.c.bf16 %v512_v62, %v506_v61  ;;  %v632_v61 = vld [vmem:[#allocation5 + $0x11f0] sm:$0xff] }
 0x12f   :  { %1702 = vmatpush1.bf16.msra.mxu1 %v1701_v3  ;;  %v524_v3 = vld [vmem:[#allocation5 + $0xe90] sm:$0xff] }
 0x130   :  { %1830 = vmatpush1.bf16.msra.mxu0 %v1829_v16  ;;  %1704 = vmatprep.subr.bf16.mxu1 %v1703_v4  ;;  %v531_v4 = vld [vmem:[#allocation5 + $0xec8] sm:$0xff]  ;;  %v1865_v29 = vpack.c.bf16 %v524_v3, %v518_v19  ;;  %v642_v19 = vsub.s32 1, %v637_v0 }
 0x131   :  { %1832 = vmatprep.subr.bf16.mxu0 %v1831_v7  ;;  %v1867_v7 = vpack.c.bf16 %v537_v5, %v531_v4 }
 0x133   :  { %1706 = vmatpush1.bf16.msra.mxu1 %v1705_v13  ;;  %v1871_v13 = vpack.c.bf16 %v549_v11, %v543_v10  ;;  %v646_v11 = vsub.s32 2, %v637_v0 }
 0x134   :  { %1834 = vmatpush1.bf16.msra.mxu0 %v1833_v14  ;;  %1708 = vmatprep.subr.bf16.mxu1 %v1707_v15  ;;  %v542_v14 = vld [vmem:[#allocation5 + $0xf20] sm:$0xff]  ;;  %v548_v15 = vld [vmem:[#allocation5 + $0xf50] sm:$0xff] }
 0x135   :  { %1836 = vmatprep.subr.bf16.mxu0 %v1835_v21  ;;  %v1873_v21 = vpack.c.bf16 %v548_v15, %v542_v14 }
 0x137   :  { %1710 = vmatpush1.bf16.msra.mxu1 %v1709_v26  ;;  %v573_v26 = vld [vmem:[#allocation5 + $0x1018] sm:$0xff] }
 0x138   :  { %1838 = vmatpush1.bf16.msra.mxu0 %v1837_v27  ;;  %v1877_v27 = vpack.c.bf16 %v560_v24, %v554_v23 }
 0x139   :  { %1840 = vmatprep.subr.bf16.mxu0 %v1839_v28  ;;  %v1879_v28 = vpack.c.bf16 %v573_v26, %v567_v25 }
 0x13a   :  { %1086 = vmatmul.mubr.f32.vlgmr.msra.gmra.mrb[2].mxu1 %v2108_v38 }
 0x13b   :  { %1228 = vmatmul.mubr.f32.vlgmr.msra.gmra.mrb[2].mxu0 %v2104_v46  ;;  %v1853_v46 = vpack.c.bf16 %v488_v52, %v482_v51  ;;  %v608_v51 = vld [vmem:[#allocation5 + $0x1130] sm:$0xff]  ;;  %v615_v52 = vld [vmem:[#allocation5 + $0x1168] sm:$0xff] }
 0x13c   :  { %1842 = vmatpush1.bf16.msra.mxu0 %v1841_v34  ;;  %1298 = vmatprep.mubr.f32.mxu0 %v1931_v42  ;;  %v1881_v34 = vpack.c.bf16 %v572_v31, %v566_v30  ;;  %v1887_v42 = vpack.c.bf16 %v597_v40, %v591_v39 }
 0x13d   :  { %1844 = vmatprep.subr.bf16.mxu0 %v1843_v35  ;;  %v1883_v35 = vpack.c.bf16 %v585_v33, %v579_v32 }
 0x140   :  { %1846 = vmatpush1.bf16.msra.mxu0 %v1845_v41  ;;  %v1885_v41 = vpack.c.bf16 %v584_v37, %v578_v36 }
 0x141   :  { %1848 = vmatprep.subr.bf16.mxu0 %v1847_v43  ;;  %v590_v43 = vld [vmem:[#allocation5 + $0x10a0] sm:$0xff] }
 0x142   :  { %v1889_v48 = vpack.c.bf16 %v596_v44, %v590_v43 }
 0x144   :  { %1850 = vmatpush1.bf16.msra.mxu0 %v1849_v49  ;;  %v1891_v49 = vpack.c.bf16 %v609_v47, %v603_v45 }
 0x145   :  { %1852 = vmatprep.subr.bf16.mxu0 %v1851_v50  ;;  %v602_v50 = vld [vmem:[#allocation5 + $0x1100] sm:$0xff] }
 0x146   :  { %v1893_v54 = vpack.c.bf16 %v608_v51, %v602_v50 }
 0x148   :  { %1854 = vmatpush1.bf16.msra.mxu0 %v1853_v46  ;;  %v1895_v46 = vpack.c.bf16 %v621_v53, %v615_v52 }
 0x149   :  { %1856 = vmatprep.subr.bf16.mxu0 %v1855_v17  ;;  %v614_v17 = vld [vmem:[#allocation5 + $0x1160] sm:$0xff] }
 0x14a   :  { %v1897_v58 = vpack.c.bf16 %v620_v55, %v614_v17 }
 0x14c   :  { %1858 = vmatpush1.bf16.msra.mxu0 %v1857_v59  ;;  %v1899_v59 = vpack.c.bf16 %v633_v57, %v627_v56 }
 0x14d   :  { %1860 = vmatprep.subr.bf16.mxu0 %v1859_v60  ;;  %v2112_v16 = vpop.f32.mrb[0].mxu1  ;;  %v626_v60 = vld [vmem:[#allocation5 + $0x11c0] sm:$0xff] }
 0x14e   :  { %v2114_v6 = vpop.f32.mrb[1].mxu1  ;;  %v1901_v62 = vpack.c.bf16 %v632_v61, %v626_v60 }
 0x150   :  { %1862 = vmatpush1.bf16.msra.mxu0 %v1861_v1  ;;  %v638_v1 = vsub.s32 0, %v637_v0 }
 0x151   :  { %1864 = vmatprep.subr.bf16.mxu0 %v1863_v2  ;;  %v634_v2 = vld [vmem:[#allocation7] sm:$0x3f] }
 0x152   :  { %v639_v3 = vrot.slane %v634_v2, %v638_v1  ;;  %v643_v4 = vrot.slane %v634_v2, %v642_v19 }
 0x154   :  { %1866 = vmatpush1.bf16.msra.mxu0 %v1865_v29  ;;  %v733_v5 = vadd.f32 %v2112_v16, %v639_v3  ;;  %v735_v29 = vadd.f32 %v2114_v6, %v643_v4  ;;  %v658_v16 = vsub.s32 5, %v637_v0 }
 0x155   :  { %1868 = vmatprep.subr.bf16.mxu0 %v1867_v7 }
 0x156   :  { %v659_v6 = vrot.slane %v634_v2, %v658_v16 }
 0x158   :  { %1870 = vmatpush1.bf16.msra.mxu0 %v1869_v12  ;;  %v650_v12 = vsub.s32 3, %v637_v0 }
 0x159   :  { %1872 = vmatprep.subr.bf16.mxu0 %v1871_v13 }
 0x15a   :  { %v651_v13 = vrot.slane %v634_v2, %v650_v12 }
 0x15c   :  { %1874 = vmatpush1.bf16.msra.mxu0 %v1873_v21  ;;  %v654_v21 = vsub.s32 4, %v637_v0 }
 0x15d   :  { %1876 = vmatprep.subr.bf16.mxu0 %v1875_v22 }
 0x15e   :  { %v655_v22 = vrot.slane %v634_v2, %v654_v21 }
 0x160   :  { %1878 = vmatpush1.bf16.msra.mxu0 %v1877_v27 }
 0x161   :  { %1880 = vmatprep.subr.bf16.mxu0 %v1879_v28 }
 0x164   :  { %1882 = vmatpush1.bf16.msra.mxu0 %v1881_v34 }
 0x165   :  { %1884 = vmatprep.subr.bf16.mxu0 %v1883_v35 }
 0x168   :  { %1886 = vmatpush1.bf16.msra.mxu0 %v1885_v41 }
 0x169   :  { %1888 = vmatprep.subr.bf16.mxu0 %v1887_v42 }
 0x16c   :  { %1890 = vmatpush1.bf16.msra.mxu0 %v1889_v48 }
 0x16d   :  { %1892 = vmatprep.subr.bf16.mxu0 %v1891_v49 }
 0x170   :  { %1894 = vmatpush1.bf16.msra.mxu0 %v1893_v54 }
 0x171   :  { %1896 = vmatprep.subr.bf16.mxu0 %v1895_v46 }
 0x174   :  { %1898 = vmatpush1.bf16.msra.mxu0 %v1897_v58 }
 0x175   :  { %1900 = vmatprep.subr.bf16.mxu0 %v1899_v59 }
 0x178   :  { %1902 = vmatpush1.bf16.msra.mxu0 %v1901_v62 }
 0x17b   :  { %1299 = vmatmul.mubr.f32.vlgmr.msra.gmra.mrb[2].mxu0 %v2108_v38  ;;  %v647_v38 = vrot.slane %v634_v2, %v646_v11 }
 0x18e   :  { %v874_v7 = vpop.f32.mrb[0].mxu0 }
 0x18f   :  { %v1904_v8 = vadd.f32 %v874_v7, %v733_v5  ;;  %v876_v9 = vpop.f32.mrb[1].mxu0 }
 0x190   :  { %v1906_v10 = vadd.f32 %v876_v9, %v735_v29 }
 0x191   :  { %1305 = vst [vmem:[#allocation8] sm:$0xff] %v1904_v8 }
 0x192   :  { %1306 = vst [vmem:[#allocation8 + $0x8] sm:$0xff] %v1906_v10 }
 0x20d   :  { %v1087_v14 = vpop.f32.mrb[2].mxu1 }
 0x20e   :  { %v1907_v15 = vadd.f32 %v1087_v14, %v647_v38  ;;  %v1089_v18 = vpop.f32.mrb[3].mxu1 }
 0x20f   :  { %v1908_v20 = vadd.f32 %v1089_v18, %v651_v13 }
 0x210   :  { %1307 = vst [vmem:[#allocation8 + $0x10] sm:$0xff] %v1907_v15 }
 0x211   :  { %1308 = vst [vmem:[#allocation8 + $0x18] sm:$0xff] %v1908_v20 }
 0x24e   :  { %v1300_v23 = vpop.f32.mrb[2].mxu0 }
 0x24f   :  { %v1909_v24 = vadd.f32 %v1300_v23, %v655_v22  ;;  %v1302_v25 = vpop.f32.mrb[3].mxu0 }
 0x250   :  { %v1910_v26 = vadd.f32 %v1302_v25, %v659_v6 }
 0x251   :  { %1309 = vst [vmem:[#allocation8 + $0x20] sm:$0xff] %v1909_v24 }
 0x252   :  { %1310 = vst [vmem:[#allocation8 + $0x28] sm:$0xff] %v1910_v26 }
 0x253   :  { %2009 = shalt.err (!%p2006_p0)
}
 0x254   :  { %s2010_s25 = scalar_lea.hbm %s2134_s3, 768 }
 0x255   :  { %p2011_p1 = scmp.ne.s32.totalorder %s2134_s3, %s2010_s25  ;;  %p2014_p2 = scmp.lt.u32.totalorder %s2010_s25, %s2134_s3 }
 0x257   :  { %p2016_p3 = pnand %p2014_p2, %p2011_p1 }
 0x259   :  { %2019 = shalt.err (!%p2016_p3)
}
 0x25a   :  { %1320 = dma.vmem_to_hbm [thread:$0]  %s1318_s21, 768, %s2134_s3, [#allocation4]  }
 0x25b   :  { %2024 = dma.done.wait [#allocation4], 768  }
 0x25c   :  { %2025 = vsyncadd [#allocation4], 4294966528 }
 0x25d   :  { %1324 = vsyncpa [#allocation3], 1 }
 0x25e   :  { %1325 = vsyncpa [#allocation6], 1 }
 0x25f   :  { %1326 = vsyncpa [#allocation4], 1 }

</bundles_post_ra>
